<compile_context>
chip_gen: v7x
topology: tpu7x:2x2x1
jax: 0.10.0
libtpu: 0.0.40
codegen_flags: <defaults>
</compile_context>

<pallas_src>
import functools

import jax
import jax.numpy as jnp
from jax.experimental import pallas as pl
from jax.experimental.pallas import tpu as pltpu

_SUBLANE = 8
_LANE = 128


def _round_up(x, m):
    return ((x + m - 1) // m) * m


def _pick_time_chunk(T, Bb, Rp, Dp, Op, weight_bytes, budget_bytes=44 * 1024 * 1024):
    """Largest time chunk Tc whose (double-buffered) footprint fits the budget."""
    resident = 2 * (Rp * Rp + Dp * Rp + Rp * Op) * weight_bytes   # weights (2 bufs, conservative)
    resident += 2 * Bb * Rp * 4                                   # x0 (2 bufs)
    resident += Bb * Rp * 4                                       # state scratch
    resident += 2 * (Rp + Op) * 4                                 # biases
    per_step = 2 * Bb * (Dp + Op) * 4                             # x_in + out chunk, double-buffered
    avail = budget_bytes - resident
    if avail <= per_step:
        return 1
    return int(min(T, avail // per_step))


def _esn_kernel(x0_ref, xin_ref, w_in_t_ref, b_in_ref, w_res_t_ref,
                w_out_t_ref, b_out_ref, out_ref, state_ref):
    """One (batch-block, time-chunk) grid step: recurrence + fused readout.

    x0_ref:      (Bb, Rp)       padded initial reservoir state
    xin_ref:     (Tc, Bb, Dp)   shifted, time-major, padded inputs (x_shift[m] = x_in[m-1])
    w_in_t_ref:  (Dp, Rp)       W_in^T   (padded, f32 or bf16)
    b_in_ref:    (1, Rp)
    w_res_t_ref: (Rp, Rp)       W_res^T  (padded, f32 or bf16)
    w_out_t_ref: (Rp, Op)       W_out^T  (padded, f32 or bf16)
    b_out_ref:   (1, Op)
    out_ref:     (Tc, Bb, Op)   fused readout output chunk
    state_ref:   (Bb, Rp)       VMEM scratch: reservoir state carried across chunks
    """
    tc_idx = pl.program_id(1)
    Tc = out_ref.shape[0]

    # (Re)initialise the carried state at the first time chunk of each batch block.
    @pl.when(tc_idx == 0)
    def _():
        state_ref[...] = x0_ref[...]

    mxu_dtype = w_res_t_ref.dtype            # f32, or bf16 when use_bf16_matmul
    w_in_t = w_in_t_ref[...]
    w_res_t = w_res_t_ref[...]
    w_out_t = w_out_t_ref[...]
    b_in = b_in_ref[...]
    b_out = b_out_ref[...]

    t0 = tc_idx * Tc                         # global time index of local step 0

    def step(i, state):
        # Input projection (independent of the state -> off the serial chain).
        u = jnp.dot(xin_ref[i].astype(mxu_dtype), w_in_t,
                    preferred_element_type=jnp.float32) + b_in
        pre = jnp.dot(state.astype(mxu_dtype), w_res_t,
                      preferred_element_type=jnp.float32) + u
        # m == 0 keeps the raw initial state (no activation / no input), matching
        # the PyTorch forward; every later step applies the recurrence.
        state = jnp.where(t0 + i == 0, state, jnp.tanh(pre))
        # Fused readout: only (T, B, dim_out) ever leaves the kernel.
        out_ref[i] = (jnp.dot(state.astype(mxu_dtype), w_out_t,
                              preferred_element_type=jnp.float32) + b_out
                      ).astype(out_ref.dtype)
        return state

    state_ref[...] = jax.lax.fori_loop(0, Tc, step, state_ref[...],
                                       unroll=min(Tc, 8))


@functools.partial(jax.jit, static_argnames=("use_bf16_matmul",))
def esn_forward(x_res_init, x_in, params, use_bf16_matmul=False):
    """x_res_init: (B, dim_res), x_in: (B, T, dim_in) -> (B, T, dim_out)."""
    x_in = jnp.asarray(x_in, jnp.float32)
    x_res_init = jnp.asarray(x_res_init, jnp.float32)
    w_in = jnp.asarray(params["w_in"], jnp.float32)      # (dim_res, dim_in)
    b_in = jnp.asarray(params["b_in"], jnp.float32)      # (dim_res,)
    w_res = jnp.asarray(params["w_res"], jnp.float32)    # (dim_res, dim_res)
    w_out = jnp.asarray(params["w_out"], jnp.float32)    # (dim_out, dim_res)
    b_out = jnp.asarray(params["b_out"], jnp.float32)    # (dim_out,)

    B, T, dim_in = x_in.shape
    dim_res = x_res_init.shape[1]
    dim_out = w_out.shape[0]

    Bp = _round_up(B, _SUBLANE)         # sublane-aligned batch
    Rp = _round_up(dim_res, _LANE)      # lane-aligned reservoir width
    Dp = _round_up(dim_in, _LANE)       # lane-aligned input width
    Op = _round_up(dim_out, _LANE)      # lane-aligned output width

    # Batch block = MXU M-rows per step; extra batch becomes the "parallel" grid
    # axis (shardable across both TensorCores on v7x).
    Bb = min(Bp, 256)
    while Bp % Bb:
        Bb -= _SUBLANE

    w_dtype = jnp.bfloat16 if use_bf16_matmul else jnp.float32
    weight_bytes = 2 if use_bf16_matmul else 4

    Tc = _pick_time_chunk(T, Bb, Rp, Dp, Op, weight_bytes)
    T_pad = _round_up(T, Tc)
    nb = Bp // Bb
    nt = T_pad // Tc

    # --- pad only the small operands; x_in is streamed per chunk (no u slab) ---
    # Time-major and shifted by one step so the kernel reads xin[m] directly
    # (states[m] consumes x_in[:, m-1, :]); x_shift[0] is unused.
    x_tm = jnp.swapaxes(x_in, 0, 1)                                    # (T, B, dim_in)
    x_shift = jnp.concatenate(
        [jnp.zeros((1, B, dim_in), jnp.float32), x_tm[:-1]], axis=0)
    x_shift = jnp.pad(x_shift, ((0, T_pad - T), (0, Bp - B), (0, Dp - dim_in)))

    x0_p = jnp.pad(x_res_init, ((0, Bp - B), (0, Rp - dim_res)))
    w_in_t_p = jnp.pad(w_in.T, ((0, Dp - dim_in), (0, Rp - dim_res))).astype(w_dtype)
    b_in_p = jnp.pad(b_in, (0, Rp - dim_res)).reshape(1, Rp)
    w_res_t_p = jnp.pad(w_res.T, ((0, Rp - dim_res), (0, Rp - dim_res))).astype(w_dtype)
    w_out_t_p = jnp.pad(w_out.T, ((0, Rp - dim_res), (0, Op - dim_out))).astype(w_dtype)
    b_out_p = jnp.pad(b_out, (0, Op - dim_out)).reshape(1, Op)

    const = lambda shape: pl.BlockSpec(shape, lambda b, t: (0,) * len(shape))

    out_p = pl.pallas_call(
        _esn_kernel,
        out_shape=jax.ShapeDtypeStruct((T_pad, Bp, Op), jnp.float32),
        grid=(nb, nt),
        in_specs=[
            pl.BlockSpec((Bb, Rp), lambda b, t: (b, 0)),           # x0
            pl.BlockSpec((Tc, Bb, Dp), lambda b, t: (t, b, 0)),    # shifted x_in chunk
            const((Dp, Rp)),                                       # W_in^T
            const((1, Rp)),                                        # b_in
            const((Rp, Rp)),                                       # W_res^T
            const((Rp, Op)),                                       # W_out^T
            const((1, Op)),                                        # b_out
        ],
        out_specs=pl.BlockSpec((Tc, Bb, Op), lambda b, t: (t, b, 0)),
        scratch_shapes=[pltpu.VMEM((Bb, Rp), jnp.float32)],
        compiler_params=pltpu.CompilerParams(
            dimension_semantics=("parallel", "arbitrary"),
            vmem_limit_bytes=50 * 1024 * 1024,
        ),
    )(x0_p, x_shift, w_in_t_p, b_in_p, w_res_t_p, w_out_t_p, b_out_p)

    # Un-pad and back to batch-first layout.
    return jnp.swapaxes(out_p[:T, :B, :dim_out], 0, 1)


def esn_reference(x_res_init, x_in, params):
    """Pure-JAX reference mirroring the PyTorch forward exactly."""
    w_in, b_in = params["w_in"], params["b_in"]
    w_res = params["w_res"]
    w_out, b_out = params["w_out"], params["b_out"]
    T = x_in.shape[1]
    outs = []
    x_res = x_res_init
    for m in range(T):
        if m > 0:
            x_res = jnp.tanh(x_res @ w_res.T + x_in[:, m - 1, :] @ w_in.T + b_in)
        outs.append(x_res @ w_out.T + b_out)
    return jnp.stack(outs, axis=1)


if __name__ == "__main__":
    # small shapes consistent with the module
    B, T, DIM_IN, DIM_RES, DIM_OUT = 2, 8, 4, 32, 4

    key = jax.random.PRNGKey(0)
    ks = jax.random.split(key, 7)
    # deterministic nn.Linear-style uniform init (synthetic, not a checkpoint)
    params = {
        "w_in":  jax.random.uniform(ks[0], (DIM_RES, DIM_IN), jnp.float32, -0.5, 0.5),
        "b_in":  jax.random.uniform(ks[1], (DIM_RES,),        jnp.float32, -0.5, 0.5),
        "w_res": jax.random.uniform(ks[2], (DIM_RES, DIM_RES), jnp.float32, -0.2, 0.2),
        "w_out": jax.random.uniform(ks[3], (DIM_OUT, DIM_RES), jnp.float32, -0.2, 0.2),
        "b_out": jax.random.uniform(ks[4], (DIM_OUT,),        jnp.float32, -0.2, 0.2),
    }
    x_in = jax.random.normal(ks[5], (B, T, DIM_IN), jnp.float32)
    x_res_init = jax.random.normal(ks[6], (B, DIM_RES), jnp.float32)

    ref = esn_reference(x_res_init, x_in, params)

    # f32 path (default): matches the f32 reference tightly.
    out = jax.block_until_ready(esn_forward(x_res_init, x_in, params))
    assert out.shape == (B, T, DIM_OUT), out.shape
    assert jnp.allclose(out, ref, atol=1e-5, rtol=1e-5), "Pallas ESN (f32) mismatch vs reference"

    # bf16-weight fast path (v6e/v7x MXU-native); intentionally looser tolerance.
    out_bf16 = jax.block_until_ready(
        esn_forward(x_res_init, x_in, params, use_bf16_matmul=True))
    assert out_bf16.shape == (B, T, DIM_OUT)
    assert jnp.allclose(out_bf16, ref, atol=5e-2, rtol=5e-2), "Pallas ESN (bf16) mismatch vs reference"

    print("KERNEL_OK")
</pallas_src>

<mosaic_0001>
module attributes {stable_mosaic.version = 11 : i64} {
  func.func @_esn_kernel(%arg0: i32, %arg1: i32, %arg2: memref<8x128xf32, #tpu.memory_space<vmem>>, %arg3: memref<8x8x128xf32, #tpu.memory_space<vmem>>, %arg4: memref<128x128xf32, #tpu.memory_space<vmem>>, %arg5: memref<1x128xf32, #tpu.memory_space<vmem>>, %arg6: memref<128x128xf32, #tpu.memory_space<vmem>>, %arg7: memref<128x128xf32, #tpu.memory_space<vmem>>, %arg8: memref<1x128xf32, #tpu.memory_space<vmem>>, %arg9: memref<8x8x128xf32, #tpu.memory_space<vmem>>, %arg10: memref<8x128xf32, #tpu.memory_space<vmem>>) attributes {dimension_semantics = [#tpu.dimension_semantics<parallel>, #tpu.dimension_semantics<arbitrary>], iteration_bounds = array<i64: 1, 1>, scalar_prefetch = 0 : i64, scratch_operands = 1 : i64, tpu.core_type = #tpu.core_type<tc>, window_params = [{transform_indices = @transform_0, window_bounds = array<i64: 8, 128>}, {transform_indices = @transform_1, window_bounds = array<i64: 8, 8, 128>}, {pipeline_mode = #tpu.pipeline_mode<synchronous>, transform_indices = @transform_2, window_bounds = array<i64: 128, 128>}, {pipeline_mode = #tpu.pipeline_mode<synchronous>, transform_indices = @transform_3, window_bounds = array<i64: 1, 128>}, {pipeline_mode = #tpu.pipeline_mode<synchronous>, transform_indices = @transform_4, window_bounds = array<i64: 128, 128>}, {pipeline_mode = #tpu.pipeline_mode<synchronous>, transform_indices = @transform_5, window_bounds = array<i64: 128, 128>}, {pipeline_mode = #tpu.pipeline_mode<synchronous>, transform_indices = @transform_6, window_bounds = array<i64: 1, 128>}, {transform_indices = @transform_7, window_bounds = array<i64: 8, 8, 128>}]} {
    %c0_i32 = arith.constant 0 : i32
    %0 = arith.cmpi eq, %arg1, %c0_i32 : i32
    %1 = arith.extui %0 : i1 to i32
    %c0_i32_0 = arith.constant 0 : i32
    %2 = arith.cmpi ne, %1, %c0_i32_0 : i32
    scf.if %2 {
      %c0_79 = arith.constant 0 : index
      %c0_80 = arith.constant 0 : index
      %163 = vector.load %arg2[%c0_79, %c0_80] : memref<8x128xf32, #tpu.memory_space<vmem>>, vector<8x128xf32>
      %c0_81 = arith.constant 0 : index
      %c0_82 = arith.constant 0 : index
      %164 = vector.load %arg10[%c0_81, %c0_82] : memref<8x128xf32, #tpu.memory_space<vmem>>, vector<8x128xf32>
      tpu.vector_store %arg10[%c0_81, %c0_82], %163 {strides = array<i32>} : memref<8x128xf32, #tpu.memory_space<vmem>>, vector<8x128xf32>,
    } else {
    }
    %c0 = arith.constant 0 : index
    %c0_1 = arith.constant 0 : index
    %3 = vector.load %arg4[%c0, %c0_1] : memref<128x128xf32, #tpu.memory_space<vmem>>, vector<128x128xf32>
    %c0_2 = arith.constant 0 : index
    %c0_3 = arith.constant 0 : index
    %4 = vector.load %arg6[%c0_2, %c0_3] : memref<128x128xf32, #tpu.memory_space<vmem>>, vector<128x128xf32>
    %c0_4 = arith.constant 0 : index
    %c0_5 = arith.constant 0 : index
    %5 = vector.load %arg7[%c0_4, %c0_5] : memref<128x128xf32, #tpu.memory_space<vmem>>, vector<128x128xf32>
    %c0_6 = arith.constant 0 : index
    %c0_7 = arith.constant 0 : index
    %6 = vector.load %arg5[%c0_6, %c0_7] : memref<1x128xf32, #tpu.memory_space<vmem>>, vector<1x128xf32>
    %c0_8 = arith.constant 0 : index
    %c0_9 = arith.constant 0 : index
    %7 = vector.load %arg8[%c0_8, %c0_9] : memref<1x128xf32, #tpu.memory_space<vmem>>, vector<1x128xf32>
    %c8_i32 = arith.constant 8 : i32
    %8 = arith.muli %arg1, %c8_i32 : i32
    %c0_10 = arith.constant 0 : index
    %c0_11 = arith.constant 0 : index
    %9 = vector.load %arg10[%c0_10, %c0_11] : memref<8x128xf32, #tpu.memory_space<vmem>>, vector<8x128xf32>
    %c0_i32_12 = arith.constant 0 : i32
    %10 = arith.index_cast %c0_i32_12 : i32 to index
    %c0_13 = arith.constant 0 : index
    %c0_14 = arith.constant 0 : index
    %11 = vector.load %arg3[%10, %c0_13, %c0_14] : memref<8x8x128xf32, #tpu.memory_space<vmem>>, vector<1x8x128xf32>
    %12 = vector.shape_cast %11 : vector<1x8x128xf32> to vector<8x128xf32>
    %cst = arith.constant dense<0.000000e+00> : vector<8x128xf32>
    %13 = tpu.matmul %12, %3, %cst {dimension_numbers = #tpu.dot_dimension_numbers<[1], [0], [0], [1], [0, 0, 1, 1], [], []>} : vector<8x128xf32>, vector<128x128xf32>, vector<8x128xf32> -> vector<8x128xf32>
    %14 = vector.broadcast %6 : vector<1x128xf32> to vector<8x128xf32>
    %15 = arith.addf %13, %14 : vector<8x128xf32>
    %cst_15 = arith.constant dense<0.000000e+00> : vector<8x128xf32>
    %16 = tpu.matmul %9, %4, %cst_15 {dimension_numbers = #tpu.dot_dimension_numbers<[1], [0], [0], [1], [0, 0, 1, 1], [], []>} : vector<8x128xf32>, vector<128x128xf32>, vector<8x128xf32> -> vector<8x128xf32>
    %17 = arith.addf %16, %15 : vector<8x128xf32>
    %18 = arith.addi %8, %c0_i32_12 : i32
    %c0_i32_16 = arith.constant 0 : i32
    %19 = arith.cmpi eq, %18, %c0_i32_16 : i32
    %20 = math.tanh %17 : vector<8x128xf32>
    %21 = arith.select %19, %9, %20 : vector<8x128xf32>
    %cst_17 = arith.constant dense<0.000000e+00> : vector<8x128xf32>
    %22 = tpu.matmul %21, %5, %cst_17 {dimension_numbers = #tpu.dot_dimension_numbers<[1], [0], [0], [1], [0, 0, 1, 1], [], []>} : vector<8x128xf32>, vector<128x128xf32>, vector<8x128xf32> -> vector<8x128xf32>
    %23 = vector.broadcast %7 : vector<1x128xf32> to vector<8x128xf32>
    %24 = arith.addf %22, %23 : vector<8x128xf32>
    %25 = arith.index_cast %c0_i32_12 : i32 to index
    %c0_18 = arith.constant 0 : index
    %c0_19 = arith.constant 0 : index
    %26 = vector.load %arg9[%25, %c0_18, %c0_19] : memref<8x8x128xf32, #tpu.memory_space<vmem>>, vector<1x8x128xf32>
    %27 = vector.shape_cast %26 : vector<1x8x128xf32> to vector<8x128xf32>
    %28 = vector.shape_cast %24 : vector<8x128xf32> to vector<1x8x128xf32>
    tpu.vector_store %arg9[%25, %c0_18, %c0_19], %28 {strides = array<i32>} : memref<8x8x128xf32, #tpu.memory_space<vmem>>, vector<1x8x128xf32>,
    %c1_i32 = arith.constant 1 : i32
    %29 = arith.index_cast %c1_i32 : i32 to index
    %c0_20 = arith.constant 0 : index
    %c0_21 = arith.constant 0 : index
    %30 = vector.load %arg3[%29, %c0_20, %c0_21] : memref<8x8x128xf32, #tpu.memory_space<vmem>>, vector<1x8x128xf32>
    %31 = vector.shape_cast %30 : vector<1x8x128xf32> to vector<8x128xf32>
    %cst_22 = arith.constant dense<0.000000e+00> : vector<8x128xf32>
    %32 = tpu.matmul %31, %3, %cst_22 {dimension_numbers = #tpu.dot_dimension_numbers<[1], [0], [0], [1], [0, 0, 1, 1], [], []>} : vector<8x128xf32>, vector<128x128xf32>, vector<8x128xf32> -> vector<8x128xf32>
    %33 = vector.broadcast %6 : vector<1x128xf32> to vector<8x128xf32>
    %34 = arith.addf %32, %33 : vector<8x128xf32>
    %cst_23 = arith.constant dense<0.000000e+00> : vector<8x128xf32>
    %35 = tpu.matmul %21, %4, %cst_23 {dimension_numbers = #tpu.dot_dimension_numbers<[1], [0], [0], [1], [0, 0, 1, 1], [], []>} : vector<8x128xf32>, vector<128x128xf32>, vector<8x128xf32> -> vector<8x128xf32>
    %36 = arith.addf %35, %34 : vector<8x128xf32>
    %37 = arith.addi %8, %c1_i32 : i32
    %c0_i32_24 = arith.constant 0 : i32
    %38 = arith.cmpi eq, %37, %c0_i32_24 : i32
    %39 = math.tanh %36 : vector<8x128xf32>
    %40 = arith.select %38, %21, %39 : vector<8x128xf32>
    %cst_25 = arith.constant dense<0.000000e+00> : vector<8x128xf32>
    %41 = tpu.matmul %40, %5, %cst_25 {dimension_numbers = #tpu.dot_dimension_numbers<[1], [0], [0], [1], [0, 0, 1, 1], [], []>} : vector<8x128xf32>, vector<128x128xf32>, vector<8x128xf32> -> vector<8x128xf32>
    %42 = vector.broadcast %7 : vector<1x128xf32> to vector<8x128xf32>
    %43 = arith.addf %41, %42 : vector<8x128xf32>
    %44 = arith.index_cast %c1_i32 : i32 to index
    %c0_26 = arith.constant 0 : index
    %c0_27 = arith.constant 0 : index
    %45 = vector.load %arg9[%44, %c0_26, %c0_27] : memref<8x8x128xf32, #tpu.memory_space<vmem>>, vector<1x8x128xf32>
    %46 = vector.shape_cast %45 : vector<1x8x128xf32> to vector<8x128xf32>
    %47 = vector.shape_cast %43 : vector<8x128xf32> to vector<1x8x128xf32>
    tpu.vector_store %arg9[%44, %c0_26, %c0_27], %47 {strides = array<i32>} : memref<8x8x128xf32, #tpu.memory_space<vmem>>, vector<1x8x128xf32>,
    %c2_i32 = arith.constant 2 : i32
    %48 = arith.index_cast %c2_i32 : i32 to index
    %c0_28 = arith.constant 0 : index
    %c0_29 = arith.constant 0 : index
    %49 = vector.load %arg3[%48, %c0_28, %c0_29] : memref<8x8x128xf32, #tpu.memory_space<vmem>>, vector<1x8x128xf32>
    %50 = vector.shape_cast %49 : vector<1x8x128xf32> to vector<8x128xf32>
    %cst_30 = arith.constant dense<0.000000e+00> : vector<8x128xf32>
    %51 = tpu.matmul %50, %3, %cst_30 {dimension_numbers = #tpu.dot_dimension_numbers<[1], [0], [0], [1], [0, 0, 1, 1], [], []>} : vector<8x128xf32>, vector<128x128xf32>, vector<8x128xf32> -> vector<8x128xf32>
    %52 = vector.broadcast %6 : vector<1x128xf32> to vector<8x128xf32>
    %53 = arith.addf %51, %52 : vector<8x128xf32>
    %cst_31 = arith.constant dense<0.000000e+00> : vector<8x128xf32>
    %54 = tpu.matmul %40, %4, %cst_31 {dimension_numbers = #tpu.dot_dimension_numbers<[1], [0], [0], [1], [0, 0, 1, 1], [], []>} : vector<8x128xf32>, vector<128x128xf32>, vector<8x128xf32> -> vector<8x128xf32>
    %55 = arith.addf %54, %53 : vector<8x128xf32>
    %56 = arith.addi %8, %c2_i32 : i32
    %c0_i32_32 = arith.constant 0 : i32
    %57 = arith.cmpi eq, %56, %c0_i32_32 : i32
    %58 = math.tanh %55 : vector<8x128xf32>
    %59 = arith.select %57, %40, %58 : vector<8x128xf32>
    %cst_33 = arith.constant dense<0.000000e+00> : vector<8x128xf32>
    %60 = tpu.matmul %59, %5, %cst_33 {dimension_numbers = #tpu.dot_dimension_numbers<[1], [0], [0], [1], [0, 0, 1, 1], [], []>} : vector<8x128xf32>, vector<128x128xf32>, vector<8x128xf32> -> vector<8x128xf32>
    %61 = vector.broadcast %7 : vector<1x128xf32> to vector<8x128xf32>
    %62 = arith.addf %60, %61 : vector<8x128xf32>
    %63 = arith.index_cast %c2_i32 : i32 to index
    %c0_34 = arith.constant 0 : index
    %c0_35 = arith.constant 0 : index
    %64 = vector.load %arg9[%63, %c0_34, %c0_35] : memref<8x8x128xf32, #tpu.memory_space<vmem>>, vector<1x8x128xf32>
    %65 = vector.shape_cast %64 : vector<1x8x128xf32> to vector<8x128xf32>
    %66 = vector.shape_cast %62 : vector<8x128xf32> to vector<1x8x128xf32>
    tpu.vector_store %arg9[%63, %c0_34, %c0_35], %66 {strides = array<i32>} : memref<8x8x128xf32, #tpu.memory_space<vmem>>, vector<1x8x128xf32>,
    %c3_i32 = arith.constant 3 : i32
    %67 = arith.index_cast %c3_i32 : i32 to index
    %c0_36 = arith.constant 0 : index
    %c0_37 = arith.constant 0 : index
    %68 = vector.load %arg3[%67, %c0_36, %c0_37] : memref<8x8x128xf32, #tpu.memory_space<vmem>>, vector<1x8x128xf32>
    %69 = vector.shape_cast %68 : vector<1x8x128xf32> to vector<8x128xf32>
    %cst_38 = arith.constant dense<0.000000e+00> : vector<8x128xf32>
    %70 = tpu.matmul %69, %3, %cst_38 {dimension_numbers = #tpu.dot_dimension_numbers<[1], [0], [0], [1], [0, 0, 1, 1], [], []>} : vector<8x128xf32>, vector<128x128xf32>, vector<8x128xf32> -> vector<8x128xf32>
    %71 = vector.broadcast %6 : vector<1x128xf32> to vector<8x128xf32>
    %72 = arith.addf %70, %71 : vector<8x128xf32>
    %cst_39 = arith.constant dense<0.000000e+00> : vector<8x128xf32>
    %73 = tpu.matmul %59, %4, %cst_39 {dimension_numbers = #tpu.dot_dimension_numbers<[1], [0], [0], [1], [0, 0, 1, 1], [], []>} : vector<8x128xf32>, vector<128x128xf32>, vector<8x128xf32> -> vector<8x128xf32>
    %74 = arith.addf %73, %72 : vector<8x128xf32>
    %75 = arith.addi %8, %c3_i32 : i32
    %c0_i32_40 = arith.constant 0 : i32
    %76 = arith.cmpi eq, %75, %c0_i32_40 : i32
    %77 = math.tanh %74 : vector<8x128xf32>
    %78 = arith.select %76, %59, %77 : vector<8x128xf32>
    %cst_41 = arith.constant dense<0.000000e+00> : vector<8x128xf32>
    %79 = tpu.matmul %78, %5, %cst_41 {dimension_numbers = #tpu.dot_dimension_numbers<[1], [0], [0], [1], [0, 0, 1, 1], [], []>} : vector<8x128xf32>, vector<128x128xf32>, vector<8x128xf32> -> vector<8x128xf32>
    %80 = vector.broadcast %7 : vector<1x128xf32> to vector<8x128xf32>
    %81 = arith.addf %79, %80 : vector<8x128xf32>
    %82 = arith.index_cast %c3_i32 : i32 to index
    %c0_42 = arith.constant 0 : index
    %c0_43 = arith.constant 0 : index
    %83 = vector.load %arg9[%82, %c0_42, %c0_43] : memref<8x8x128xf32, #tpu.memory_space<vmem>>, vector<1x8x128xf32>
    %84 = vector.shape_cast %83 : vector<1x8x128xf32> to vector<8x128xf32>
    %85 = vector.shape_cast %81 : vector<8x128xf32> to vector<1x8x128xf32>
    tpu.vector_store %arg9[%82, %c0_42, %c0_43], %85 {strides = array<i32>} : memref<8x8x128xf32, #tpu.memory_space<vmem>>, vector<1x8x128xf32>,
    %c4_i32 = arith.constant 4 : i32
    %86 = arith.index_cast %c4_i32 : i32 to index
    %c0_44 = arith.constant 0 : index
    %c0_45 = arith.constant 0 : index
    %87 = vector.load %arg3[%86, %c0_44, %c0_45] : memref<8x8x128xf32, #tpu.memory_space<vmem>>, vector<1x8x128xf32>
    %88 = vector.shape_cast %87 : vector<1x8x128xf32> to vector<8x128xf32>
    %cst_46 = arith.constant dense<0.000000e+00> : vector<8x128xf32>
    %89 = tpu.matmul %88, %3, %cst_46 {dimension_numbers = #tpu.dot_dimension_numbers<[1], [0], [0], [1], [0, 0, 1, 1], [], []>} : vector<8x128xf32>, vector<128x128xf32>, vector<8x128xf32> -> vector<8x128xf32>
    %90 = vector.broadcast %6 : vector<1x128xf32> to vector<8x128xf32>
    %91 = arith.addf %89, %90 : vector<8x128xf32>
    %cst_47 = arith.constant dense<0.000000e+00> : vector<8x128xf32>
    %92 = tpu.matmul %78, %4, %cst_47 {dimension_numbers = #tpu.dot_dimension_numbers<[1], [0], [0], [1], [0, 0, 1, 1], [], []>} : vector<8x128xf32>, vector<128x128xf32>, vector<8x128xf32> -> vector<8x128xf32>
    %93 = arith.addf %92, %91 : vector<8x128xf32>
    %94 = arith.addi %8, %c4_i32 : i32
    %c0_i32_48 = arith.constant 0 : i32
    %95 = arith.cmpi eq, %94, %c0_i32_48 : i32
    %96 = math.tanh %93 : vector<8x128xf32>
    %97 = arith.select %95, %78, %96 : vector<8x128xf32>
    %cst_49 = arith.constant dense<0.000000e+00> : vector<8x128xf32>
    %98 = tpu.matmul %97, %5, %cst_49 {dimension_numbers = #tpu.dot_dimension_numbers<[1], [0], [0], [1], [0, 0, 1, 1], [], []>} : vector<8x128xf32>, vector<128x128xf32>, vector<8x128xf32> -> vector<8x128xf32>
    %99 = vector.broadcast %7 : vector<1x128xf32> to vector<8x128xf32>
    %100 = arith.addf %98, %99 : vector<8x128xf32>
    %101 = arith.index_cast %c4_i32 : i32 to index
    %c0_50 = arith.constant 0 : index
    %c0_51 = arith.constant 0 : index
    %102 = vector.load %arg9[%101, %c0_50, %c0_51] : memref<8x8x128xf32, #tpu.memory_space<vmem>>, vector<1x8x128xf32>
    %103 = vector.shape_cast %102 : vector<1x8x128xf32> to vector<8x128xf32>
    %104 = vector.shape_cast %100 : vector<8x128xf32> to vector<1x8x128xf32>
    tpu.vector_store %arg9[%101, %c0_50, %c0_51], %104 {strides = array<i32>} : memref<8x8x128xf32, #tpu.memory_space<vmem>>, vector<1x8x128xf32>,
    %c5_i32 = arith.constant 5 : i32
    %105 = arith.index_cast %c5_i32 : i32 to index
    %c0_52 = arith.constant 0 : index
    %c0_53 = arith.constant 0 : index
    %106 = vector.load %arg3[%105, %c0_52, %c0_53] : memref<8x8x128xf32, #tpu.memory_space<vmem>>, vector<1x8x128xf32>
    %107 = vector.shape_cast %106 : vector<1x8x128xf32> to vector<8x128xf32>
    %cst_54 = arith.constant dense<0.000000e+00> : vector<8x128xf32>
    %108 = tpu.matmul %107, %3, %cst_54 {dimension_numbers = #tpu.dot_dimension_numbers<[1], [0], [0], [1], [0, 0, 1, 1], [], []>} : vector<8x128xf32>, vector<128x128xf32>, vector<8x128xf32> -> vector<8x128xf32>
    %109 = vector.broadcast %6 : vector<1x128xf32> to vector<8x128xf32>
    %110 = arith.addf %108, %109 : vector<8x128xf32>
    %cst_55 = arith.constant dense<0.000000e+00> : vector<8x128xf32>
    %111 = tpu.matmul %97, %4, %cst_55 {dimension_numbers = #tpu.dot_dimension_numbers<[1], [0], [0], [1], [0, 0, 1, 1], [], []>} : vector<8x128xf32>, vector<128x128xf32>, vector<8x128xf32> -> vector<8x128xf32>
    %112 = arith.addf %111, %110 : vector<8x128xf32>
    %113 = arith.addi %8, %c5_i32 : i32
    %c0_i32_56 = arith.constant 0 : i32
    %114 = arith.cmpi eq, %113, %c0_i32_56 : i32
    %115 = math.tanh %112 : vector<8x128xf32>
    %116 = arith.select %114, %97, %115 : vector<8x128xf32>
    %cst_57 = arith.constant dense<0.000000e+00> : vector<8x128xf32>
    %117 = tpu.matmul %116, %5, %cst_57 {dimension_numbers = #tpu.dot_dimension_numbers<[1], [0], [0], [1], [0, 0, 1, 1], [], []>} : vector<8x128xf32>, vector<128x128xf32>, vector<8x128xf32> -> vector<8x128xf32>
    %118 = vector.broadcast %7 : vector<1x128xf32> to vector<8x128xf32>
    %119 = arith.addf %117, %118 : vector<8x128xf32>
    %120 = arith.index_cast %c5_i32 : i32 to index
    %c0_58 = arith.constant 0 : index
    %c0_59 = arith.constant 0 : index
    %121 = vector.load %arg9[%120, %c0_58, %c0_59] : memref<8x8x128xf32, #tpu.memory_space<vmem>>, vector<1x8x128xf32>
    %122 = vector.shape_cast %121 : vector<1x8x128xf32> to vector<8x128xf32>
    %123 = vector.shape_cast %119 : vector<8x128xf32> to vector<1x8x128xf32>
    tpu.vector_store %arg9[%120, %c0_58, %c0_59], %123 {strides = array<i32>} : memref<8x8x128xf32, #tpu.memory_space<vmem>>, vector<1x8x128xf32>,
    %c6_i32 = arith.constant 6 : i32
    %124 = arith.index_cast %c6_i32 : i32 to index
    %c0_60 = arith.constant 0 : index
    %c0_61 = arith.constant 0 : index
    %125 = vector.load %arg3[%124, %c0_60, %c0_61] : memref<8x8x128xf32, #tpu.memory_space<vmem>>, vector<1x8x128xf32>
    %126 = vector.shape_cast %125 : vector<1x8x128xf32> to vector<8x128xf32>
    %cst_62 = arith.constant dense<0.000000e+00> : vector<8x128xf32>
    %127 = tpu.matmul %126, %3, %cst_62 {dimension_numbers = #tpu.dot_dimension_numbers<[1], [0], [0], [1], [0, 0, 1, 1], [], []>} : vector<8x128xf32>, vector<128x128xf32>, vector<8x128xf32> -> vector<8x128xf32>
    %128 = vector.broadcast %6 : vector<1x128xf32> to vector<8x128xf32>
    %129 = arith.addf %127, %128 : vector<8x128xf32>
    %cst_63 = arith.constant dense<0.000000e+00> : vector<8x128xf32>
    %130 = tpu.matmul %116, %4, %cst_63 {dimension_numbers = #tpu.dot_dimension_numbers<[1], [0], [0], [1], [0, 0, 1, 1], [], []>} : vector<8x128xf32>, vector<128x128xf32>, vector<8x128xf32> -> vector<8x128xf32>
    %131 = arith.addf %130, %129 : vector<8x128xf32>
    %132 = arith.addi %8, %c6_i32 : i32
    %c0_i32_64 = arith.constant 0 : i32
    %133 = arith.cmpi eq, %132, %c0_i32_64 : i32
    %134 = math.tanh %131 : vector<8x128xf32>
    %135 = arith.select %133, %116, %134 : vector<8x128xf32>
    %cst_65 = arith.constant dense<0.000000e+00> : vector<8x128xf32>
    %136 = tpu.matmul %135, %5, %cst_65 {dimension_numbers = #tpu.dot_dimension_numbers<[1], [0], [0], [1], [0, 0, 1, 1], [], []>} : vector<8x128xf32>, vector<128x128xf32>, vector<8x128xf32> -> vector<8x128xf32>
    %137 = vector.broadcast %7 : vector<1x128xf32> to vector<8x128xf32>
    %138 = arith.addf %136, %137 : vector<8x128xf32>
    %139 = arith.index_cast %c6_i32 : i32 to index
    %c0_66 = arith.constant 0 : index
    %c0_67 = arith.constant 0 : index
    %140 = vector.load %arg9[%139, %c0_66, %c0_67] : memref<8x8x128xf32, #tpu.memory_space<vmem>>, vector<1x8x128xf32>
    %141 = vector.shape_cast %140 : vector<1x8x128xf32> to vector<8x128xf32>
    %142 = vector.shape_cast %138 : vector<8x128xf32> to vector<1x8x128xf32>
    tpu.vector_store %arg9[%139, %c0_66, %c0_67], %142 {strides = array<i32>} : memref<8x8x128xf32, #tpu.memory_space<vmem>>, vector<1x8x128xf32>,
    %c7_i32 = arith.constant 7 : i32
    %143 = arith.index_cast %c7_i32 : i32 to index
    %c0_68 = arith.constant 0 : index
    %c0_69 = arith.constant 0 : index
    %144 = vector.load %arg3[%143, %c0_68, %c0_69] : memref<8x8x128xf32, #tpu.memory_space<vmem>>, vector<1x8x128xf32>
    %145 = vector.shape_cast %144 : vector<1x8x128xf32> to vector<8x128xf32>
    %cst_70 = arith.constant dense<0.000000e+00> : vector<8x128xf32>
    %146 = tpu.matmul %145, %3, %cst_70 {dimension_numbers = #tpu.dot_dimension_numbers<[1], [0], [0], [1], [0, 0, 1, 1], [], []>} : vector<8x128xf32>, vector<128x128xf32>, vector<8x128xf32> -> vector<8x128xf32>
    %147 = vector.broadcast %6 : vector<1x128xf32> to vector<8x128xf32>
    %148 = arith.addf %146, %147 : vector<8x128xf32>
    %cst_71 = arith.constant dense<0.000000e+00> : vector<8x128xf32>
    %149 = tpu.matmul %135, %4, %cst_71 {dimension_numbers = #tpu.dot_dimension_numbers<[1], [0], [0], [1], [0, 0, 1, 1], [], []>} : vector<8x128xf32>, vector<128x128xf32>, vector<8x128xf32> -> vector<8x128xf32>
    %150 = arith.addf %149, %148 : vector<8x128xf32>
    %151 = arith.addi %8, %c7_i32 : i32
    %c0_i32_72 = arith.constant 0 : i32
    %152 = arith.cmpi eq, %151, %c0_i32_72 : i32
    %153 = math.tanh %150 : vector<8x128xf32>
    %154 = arith.select %152, %135, %153 : vector<8x128xf32>
    %cst_73 = arith.constant dense<0.000000e+00> : vector<8x128xf32>
    %155 = tpu.matmul %154, %5, %cst_73 {dimension_numbers = #tpu.dot_dimension_numbers<[1], [0], [0], [1], [0, 0, 1, 1], [], []>} : vector<8x128xf32>, vector<128x128xf32>, vector<8x128xf32> -> vector<8x128xf32>
    %156 = vector.broadcast %7 : vector<1x128xf32> to vector<8x128xf32>
    %157 = arith.addf %155, %156 : vector<8x128xf32>
    %158 = arith.index_cast %c7_i32 : i32 to index
    %c0_74 = arith.constant 0 : index
    %c0_75 = arith.constant 0 : index
    %159 = vector.load %arg9[%158, %c0_74, %c0_75] : memref<8x8x128xf32, #tpu.memory_space<vmem>>, vector<1x8x128xf32>
    %160 = vector.shape_cast %159 : vector<1x8x128xf32> to vector<8x128xf32>
    %161 = vector.shape_cast %157 : vector<8x128xf32> to vector<1x8x128xf32>
    tpu.vector_store %arg9[%158, %c0_74, %c0_75], %161 {strides = array<i32>} : memref<8x8x128xf32, #tpu.memory_space<vmem>>, vector<1x8x128xf32>,
    %c8_i32_76 = arith.constant 8 : i32
    %c0_77 = arith.constant 0 : index
    %c0_78 = arith.constant 0 : index
    %162 = vector.load %arg10[%c0_77, %c0_78] : memref<8x128xf32, #tpu.memory_space<vmem>>, vector<8x128xf32>
    tpu.vector_store %arg10[%c0_77, %c0_78], %154 {strides = array<i32>} : memref<8x128xf32, #tpu.memory_space<vmem>>, vector<8x128xf32>,
    return
  }
  func.func @transform_0(%arg0: i32, %arg1: i32) -> (i32, i32) {
    %c0_i32 = arith.constant 0 : i32
    %c0_i32_0 = arith.constant 0 : i32
    return %arg0, %c0_i32 : i32, i32
  }
  func.func @transform_1(%arg0: i32, %arg1: i32) -> (i32, i32, i32) {
    %c0_i32 = arith.constant 0 : i32
    %c0_i32_0 = arith.constant 0 : i32
    return %arg1, %arg0, %c0_i32 : i32, i32, i32
  }
  func.func @transform_2(%arg0: i32, %arg1: i32) -> (i32, i32) {
    %c0_i32 = arith.constant 0 : i32
    %c0_i32_0 = arith.constant 0 : i32
    %c0_i32_1 = arith.constant 0 : i32
    return %c0_i32, %c0_i32_0 : i32, i32
  }
  func.func @transform_3(%arg0: i32, %arg1: i32) -> (i32, i32) {
    %c0_i32 = arith.constant 0 : i32
    %c0_i32_0 = arith.constant 0 : i32
    %c0_i32_1 = arith.constant 0 : i32
    return %c0_i32, %c0_i32_0 : i32, i32
  }
  func.func @transform_4(%arg0: i32, %arg1: i32) -> (i32, i32) {
    %c0_i32 = arith.constant 0 : i32
    %c0_i32_0 = arith.constant 0 : i32
    %c0_i32_1 = arith.constant 0 : i32
    return %c0_i32, %c0_i32_0 : i32, i32
  }
  func.func @transform_5(%arg0: i32, %arg1: i32) -> (i32, i32) {
    %c0_i32 = arith.constant 0 : i32
    %c0_i32_0 = arith.constant 0 : i32
    %c0_i32_1 = arith.constant 0 : i32
    return %c0_i32, %c0_i32_0 : i32, i32
  }
  func.func @transform_6(%arg0: i32, %arg1: i32) -> (i32, i32) {
    %c0_i32 = arith.constant 0 : i32
    %c0_i32_0 = arith.constant 0 : i32
    %c0_i32_1 = arith.constant 0 : i32
    return %c0_i32, %c0_i32_0 : i32, i32
  }
  func.func @transform_7(%arg0: i32, %arg1: i32) -> (i32, i32, i32) {
    %c0_i32 = arith.constant 0 : i32
    %c0_i32_0 = arith.constant 0 : i32
    return %arg1, %arg0, %c0_i32 : i32, i32, i32
  }
}

</mosaic_0001>

<bundles_post_ra>
// kernel: esn_forward.1
= control target key start
LH: loop header
LB: loop body
LE: loop exit
PB: predicated region body
PF: predicated region fallthrough
CT: control target
= control target key end

     0   :  { %v3744_v0 = vmov 0.0|0.0   ;;  %vm3745_vm0 = vmmov 0   ;;  %v3746_v4 = vmov 0.0   ;;  %s4492_s4 = inlined_call_operand.vmem [shape: f32[128,128], index: 4, kind: input, shape index: {}]   ;;  %s4493_s2 = inlined_call_operand.vmem [shape: f32[128,128], index: 2, kind: input, shape index: {}]   ;;  %s4494_s0 = inlined_call_operand.vmem [shape: f32[8,128], index: 0, kind: input, shape index: {}]   ;;  %s4495_s1 = inlined_call_operand.vmem [shape: f32[8,8,128], index: 1, kind: input, shape index: {}]   ;;  %s4496_s5 = inlined_call_operand.vmem [shape: f32[128,128], index: 5, kind: input, shape index: {}]   ;;  %s4497_s3 = inlined_call_operand.vmem [shape: f32[1,128], index: 3, kind: input, shape index: {}]   ;;  %s4498_s6 = inlined_call_operand.vmem [shape: f32[1,128], index: 6, kind: input, shape index: {}]   ;;  %s4499_s7 = inlined_call_operand.vmem [shape: f32[8,8,128], index: 7, kind: output, shape index: {}]  }
   0x1   :  { %3154 = vmatprep.subr.bf16.mxu1 %v3744_v0  ;;  %v48_v1 = vld [vmem:[%s4492_s4] sm:$0xff]  ;;  %v49_v2 = vld [vmem:[%s4492_s4 + $0x8] sm:$0xff]  ;;  %v50_v3 = vld [vmem:[%s4492_s4 + $0x10] sm:$0xff]  ;;  %2357 = vmatprep.mubr.msk.f32.mxu1 %vm3745_vm0, %v3746_v4 }
   0x2   :  { %v3799_v5 = vpack.c.bf16 %v49_v2, %v48_v1  ;;  %v51_v6 = vld [vmem:[%s4492_s4 + $0x18] sm:$0xff]  ;;  %3130 = vmatprep.subr.bf16.mxu0 %v3744_v0  ;;  %2322 = vmatprep.mubr.msk.f32.mxu0 %vm3745_vm0, %v3746_v4  ;;  %v52_v8 = vld [vmem:[%s4492_s4 + $0x20] sm:$0xff]  ;;  %v53_v9 = vld [vmem:[%s4492_s4 + $0x28] sm:$0xff] }
   0x3   :  { %v3808_v7 = vpack.c.bf16 %v51_v6, %v50_v3  ;;  %v32_v10 = vld [vmem:[%s4493_s2] sm:$0xff]  ;;  %v33_v11 = vld [vmem:[%s4493_s2 + $0x8] sm:$0xff]  ;;  %v3824_v12 = vpack.c.bf16 %v53_v9, %v52_v8  ;;  %v54_v13 = vld [vmem:[%s4492_s4 + $0x30] sm:$0xff] }
   0x4   :  { %3156 = vmatpush3.bf16.msra.mxu1 %v3799_v5  ;;  %v3829_v14 = vpack.c.bf16 %v33_v11, %v32_v10  ;;  %v55_v15 = vld [vmem:[%s4492_s4 + $0x38] sm:$0xff]  ;;  %v34_v16 = vld [vmem:[%s4493_s2 + $0x10] sm:$0xff]  ;;  %v56_v19 = vld [vmem:[%s4492_s4 + $0x40] sm:$0xff] }
   0x5   :  { %3157 = vmatprep.subr.bf16.mxu1 %v3744_v0  ;;  %v35_v17 = vld [vmem:[%s4493_s2 + $0x18] sm:$0xff]  ;;  %v3844_v18 = vpack.c.bf16 %v55_v15, %v54_v13  ;;  %v57_v21 = vld [vmem:[%s4492_s4 + $0x48] sm:$0xff]  ;;  %v36_v22 = vld [vmem:[%s4493_s2 + $0x20] sm:$0xff] }
   0x6   :  { %3132 = vmatpush3.bf16.msra.mxu0 %v3829_v14  ;;  %v3849_v20 = vpack.c.bf16 %v35_v17, %v34_v16  ;;  %v37_v23 = vld [vmem:[%s4493_s2 + $0x28] sm:$0xff]  ;;  %v3864_v24 = vpack.c.bf16 %v57_v21, %v56_v19  ;;  %v58_v25 = vld [vmem:[%s4492_s4 + $0x50] sm:$0xff]  ;;  %v59_v27 = vld [vmem:[%s4492_s4 + $0x58] sm:$0xff] }
   0x7   :  { %3133 = vmatprep.subr.bf16.mxu0 %v3744_v0  ;;  %v3869_v26 = vpack.c.bf16 %v37_v23, %v36_v22  ;;  %v38_v28 = vld [vmem:[%s4493_s2 + $0x30] sm:$0xff]  ;;  %v39_v29 = vld [vmem:[%s4493_s2 + $0x38] sm:$0xff]  ;;  %v3884_v30 = vpack.c.bf16 %v59_v27, %v58_v25  ;;  %v60_v31 = vld [vmem:[%s4492_s4 + $0x60] sm:$0xff] }
   0x8   :  { %3159 = vmatpush3.bf16.msra.mxu1 %v3808_v7  ;;  %v3889_v32 = vpack.c.bf16 %v39_v29, %v38_v28  ;;  %v61_v33 = vld [vmem:[%s4492_s4 + $0x68] sm:$0xff]  ;;  %v40_v34 = vld [vmem:[%s4493_s2 + $0x40] sm:$0xff]  ;;  %v62_v37 = vld [vmem:[%s4492_s4 + $0x70] sm:$0xff] }
   0x9   :  { %3160 = vmatprep.subr.bf16.mxu1 %v3744_v0  ;;  %v41_v35 = vld [vmem:[%s4493_s2 + $0x48] sm:$0xff]  ;;  %v3904_v36 = vpack.c.bf16 %v61_v33, %v60_v31  ;;  %v63_v39 = vld [vmem:[%s4492_s4 + $0x78] sm:$0xff]  ;;  %v42_v40 = vld [vmem:[%s4493_s2 + $0x50] sm:$0xff] }
   0xa   :  { %3135 = vmatpush3.bf16.msra.mxu0 %v3849_v20  ;;  %v3909_v38 = vpack.c.bf16 %v41_v35, %v40_v34  ;;  %v43_v41 = vld [vmem:[%s4493_s2 + $0x58] sm:$0xff]  ;;  %v3924_v42 = vpack.c.bf16 %v63_v39, %v62_v37  ;;  %v44_v44 = vld [vmem:[%s4493_s2 + $0x60] sm:$0xff]  ;;  %v45_v45 = vld [vmem:[%s4493_s2 + $0x68] sm:$0xff] }
   0xb   :  { %3136 = vmatprep.subr.bf16.mxu0 %v3744_v0  ;;  %v3926_v43 = vpack.c.bf16 %v43_v41, %v42_v40  ;;  %v3941_v46 = vld [vmem:[%s4494_s0] sm:$0xff]  ;;  %v3943_v47 = vpack.c.bf16 %v45_v45, %v44_v44  ;;  %v46_v48 = vld [vmem:[%s4493_s2 + $0x70] sm:$0xff]  ;;  %v47_v49 = vld [vmem:[%s4493_s2 + $0x78] sm:$0xff] }
   0xc   :  { %3162 = vmatpush3.bf16.msra.mxu1 %v3824_v12  ;;  %v3956_v50 = vpack.c.bf16 %v47_v49, %v46_v48  ;;  %v1868_v51 = vld [vmem:[%s4495_s1 + $0x8] sm:$0xff]  ;;  %v84_v52 = vld [vmem:[%s4495_s1] sm:$0xff]  ;;  %v66_v55 = vld [vmem:[%s4496_s5 + $0x10] sm:$0xff] }
   0xd   :  { %3163 = vmatprep.subr.bf16.mxu1 %v3744_v0  ;;  %v64_v53 = vld [vmem:[%s4496_s5] sm:$0xff]  ;;  %v65_v54 = vld [vmem:[%s4496_s5 + $0x8] sm:$0xff]  ;;  %v67_v57 = vld [vmem:[%s4496_s5 + $0x18] sm:$0xff] }
   0xe   :  { %3138 = vmatpush3.bf16.msra.mxu0 %v3869_v26  ;;  %v4013_v56 = vpack.c.bf16 %v65_v54, %v64_v53  ;;  %v4021_v58 = vpack.c.bf16 %v67_v57, %v66_v55  ;;  %v68_v59 = vld [vmem:[%s4496_s5 + $0x20] sm:$0xff]  ;;  %v69_v60 = vld [vmem:[%s4496_s5 + $0x28] sm:$0xff]  ;;  %v70_v62 = vld [vmem:[%s4496_s5 + $0x30] sm:$0xff] }
   0xf   :  { %3139 = vmatprep.subr.bf16.mxu0 %v3744_v0  ;;  %v4033_v61 = vpack.c.bf16 %v69_v60, %v68_v59  ;;  %v71_v63 = vld [vmem:[%s4496_s5 + $0x38] sm:$0xff]  ;;  %v72_v2 = vld [vmem:[%s4496_s5 + $0x40] sm:$0xff]  ;;  %v73_v3 = vld [vmem:[%s4496_s5 + $0x48] sm:$0xff] }
  0x10   :  { %3165 = vmatpush3.bf16.msra.mxu1 %v3844_v18  ;;  %v4045_v1 = vpack.c.bf16 %v71_v63, %v70_v62  ;;  %v4057_v6 = vpack.c.bf16 %v73_v3, %v72_v2  ;;  %v74_v8 = vld [vmem:[%s4496_s5 + $0x50] sm:$0xff]  ;;  %v75_v9 = vld [vmem:[%s4496_s5 + $0x58] sm:$0xff]  ;;  %v76_v11 = vld [vmem:[%s4496_s5 + $0x60] sm:$0xff] }
  0x11   :  { %3166 = vmatprep.subr.bf16.mxu1 %v3744_v0  ;;  %v4069_v10 = vpack.c.bf16 %v75_v9, %v74_v8  ;;  %v77_v13 = vld [vmem:[%s4496_s5 + $0x68] sm:$0xff]  ;;  %v78_v16 = vld [vmem:[%s4496_s5 + $0x70] sm:$0xff]  ;;  %v79_v17 = vld [vmem:[%s4496_s5 + $0x78] sm:$0xff] }
  0x12   :  { %3141 = vmatpush3.bf16.msra.mxu0 %v3889_v32  ;;  %v4081_v15 = vpack.c.bf16 %v77_v13, %v76_v11  ;;  %v4093_v19 = vpack.c.bf16 %v79_v17, %v78_v16  ;;  %v4124_v23 = vld [vmem:[%s4497_s3] ss:$0 sm:$0xff]  ;;  %v1870_v34 = vld [vmem:[%s4495_s1 + $0x10] sm:$0xff]  ;;  %v1876_v17 = vld [vmem:[%s4495_s1 + $0x28] sm:$0xff] }
  0x13   :  { %3142 = vmatprep.subr.bf16.mxu0 %v3744_v0  ;;  %v4157_v35 = vld [vmem:[%s4498_s6] ss:$0 sm:$0xff] }
  0x14   :  { %3168 = vmatpush3.bf16.msra.mxu1 %v3864_v24  ;;  %v1874_v63 = vld [vmem:[%s4495_s1 + $0x20] sm:$0xff] }
  0x15   :  { %3169 = vmatprep.subr.bf16.mxu1 %v3744_v0 }
  0x16   :  { %3144 = vmatpush3.bf16.msra.mxu0 %v3909_v38 }
  0x17   :  { %3145 = vmatprep.subr.bf16.mxu0 %v3744_v0 }
  0x18   :  { %3171 = vmatpush3.bf16.msra.mxu1 %v3884_v30 }
  0x19   :  { %3172 = vmatprep.subr.bf16.mxu1 %v3744_v0 }
  0x1a   :  { %3147 = vmatpush3.bf16.msra.mxu0 %v3926_v43 }
  0x1b   :  { %3148 = vmatprep.subr.bf16.mxu0 %v3744_v0 }
  0x1c   :  { %3174 = vmatpush3.bf16.msra.mxu1 %v3904_v36 }
  0x1d   :  { %3175 = vmatprep.subr.bf16.mxu1 %v3744_v0 }
  0x1e   :  { %3150 = vmatpush3.bf16.msra.mxu0 %v3943_v47 }
  0x1f   :  { %3151 = vmatprep.subr.bf16.mxu0 %v3744_v0 }
  0x20   :  { %3177 = vmatpush3.bf16.msra.mxu1 %v3924_v42 }
  0x21   :  { %3202 = vmatprep.subr.bf16.mxu1 %v3744_v0 }
  0x22   :  { %3153 = vmatpush3.bf16.msra.mxu0 %v3956_v50 }
  0x23   :  { %2358 = vmatmul.mubr.f32.vlgmr.msra.gmra.mrb[0].mxu1 %v3941_v46  ;;  %3178 = vmatprep.subr.bf16.mxu0 %v3744_v0 }
  0x24   :  { %3204 = vmatpush3.bf16.msra.mxu1 %v3829_v14  ;;  %2427 = vmatprep.mubr.msk.f32.mxu1 %vm3745_vm0, %v3746_v4 }
  0x25   :  { %3205 = vmatprep.subr.bf16.mxu1 %v3744_v0  ;;  %2323 = vmatmul.mubr.f32.vlgmr.msra.gmra.mrb[0].mxu0 %v84_v52  ;;  %v1872_v52 = vld [vmem:[%s4495_s1 + $0x18] sm:$0xff] }
  0x26   :  { %2392 = vmatprep.mubr.msk.f32.mxu0 %vm3745_vm0, %v3746_v4  ;;  %3180 = vmatpush3.bf16.msra.mxu0 %v4013_v56 }
  0x27   :  { %3181 = vmatprep.subr.bf16.mxu0 %v3744_v0 }
  0x28   :  { %3207 = vmatpush3.bf16.msra.mxu1 %v3849_v20 }
  0x29   :  { %3208 = vmatprep.subr.bf16.mxu1 %v3744_v0 }
  0x2a   :  { %3183 = vmatpush3.bf16.msra.mxu0 %v4021_v58 }
  0x2b   :  { %3184 = vmatprep.subr.bf16.mxu0 %v3744_v0 }
  0x2c   :  { %3210 = vmatpush3.bf16.msra.mxu1 %v3869_v26 }
  0x2d   :  { %3211 = vmatprep.subr.bf16.mxu1 %v3744_v0 }
  0x2e   :  { %3186 = vmatpush3.bf16.msra.mxu0 %v4033_v61 }
  0x2f   :  { %3187 = vmatprep.subr.bf16.mxu0 %v3744_v0 }
  0x30   :  { %3213 = vmatpush3.bf16.msra.mxu1 %v3889_v32 }
  0x31   :  { %3214 = vmatprep.subr.bf16.mxu1 %v3744_v0 }
  0x32   :  { %3189 = vmatpush3.bf16.msra.mxu0 %v4045_v1 }
  0x33   :  { %3190 = vmatprep.subr.bf16.mxu0 %v3744_v0 }
  0x34   :  { %3216 = vmatpush3.bf16.msra.mxu1 %v3909_v38 }
  0x35   :  { %3217 = vmatprep.subr.bf16.mxu1 %v3744_v0 }
  0x36   :  { %3192 = vmatpush3.bf16.msra.mxu0 %v4057_v6 }
  0x37   :  { %3193 = vmatprep.subr.bf16.mxu0 %v3744_v0 }
  0x38   :  { %3219 = vmatpush3.bf16.msra.mxu1 %v3926_v43 }
  0x39   :  { %3220 = vmatprep.subr.bf16.mxu1 %v3744_v0 }
  0x3a   :  { %3195 = vmatpush3.bf16.msra.mxu0 %v4069_v10 }
  0x3b   :  { %3196 = vmatprep.subr.bf16.mxu0 %v3744_v0 }
  0x3c   :  { %3222 = vmatpush3.bf16.msra.mxu1 %v3943_v47 }
  0x3d   :  { %3223 = vmatprep.subr.bf16.mxu1 %v3744_v0 }
  0x3e   :  { %3198 = vmatpush3.bf16.msra.mxu0 %v4081_v15 }
  0x3f   :  { %3199 = vmatprep.subr.bf16.mxu0 %v3744_v0 }
  0x40   :  { %3225 = vmatpush3.bf16.msra.mxu1 %v3956_v50 }
  0x41   :  { %3226 = vmatprep.subr.bf16.mxu1 %v3744_v0 }
  0x42   :  { %3201 = vmatpush3.bf16.msra.mxu0 %v4093_v19 }
  0x43   :  { %2428 = vmatmul.mubr.f32.vlgmr.msra.gmra.mrb[2].mxu1 %v1868_v51  ;;  %3250 = vmatprep.subr.bf16.mxu0 %v3744_v0 }
  0x44   :  { %3228 = vmatpush3.bf16.msra.mxu1 %v3799_v5  ;;  %2462 = vmatprep.mubr.msk.f32.mxu1 %vm3745_vm0, %v3746_v4 }
  0x45   :  { %3229 = vmatprep.subr.bf16.mxu1 %v3744_v0  ;;  %2393 = vmatmul.mubr.f32.vlgmr.msra.gmra.mrb[2].mxu0 %v3941_v46 }
  0x46   :  { %3252 = vmatpush3.bf16.msra.mxu0 %v4013_v56  ;;  %2497 = vmatprep.mubr.msk.f32.mxu0 %vm3745_vm0, %v3746_v4 }
  0x47   :  { %3253 = vmatprep.subr.bf16.mxu0 %v3744_v0 }
  0x48   :  { %3231 = vmatpush3.bf16.msra.mxu1 %v3808_v7 }
  0x49   :  { %3232 = vmatprep.subr.bf16.mxu1 %v3744_v0 }
  0x4a   :  { %3255 = vmatpush3.bf16.msra.mxu0 %v4021_v58 }
  0x4b   :  { %3256 = vmatprep.subr.bf16.mxu0 %v3744_v0 }
  0x4c   :  { %3234 = vmatpush3.bf16.msra.mxu1 %v3824_v12 }
  0x4d   :  { %3235 = vmatprep.subr.bf16.mxu1 %v3744_v0 }
  0x4e   :  { %3258 = vmatpush3.bf16.msra.mxu0 %v4033_v61 }
  0x4f   :  { %3259 = vmatprep.subr.bf16.mxu0 %v3744_v0 }
  0x50   :  { %3237 = vmatpush3.bf16.msra.mxu1 %v3844_v18 }
  0x51   :  { %3238 = vmatprep.subr.bf16.mxu1 %v3744_v0 }
  0x52   :  { %3261 = vmatpush3.bf16.msra.mxu0 %v4045_v1 }
  0x53   :  { %3262 = vmatprep.subr.bf16.mxu0 %v3744_v0 }
  0x54   :  { %3240 = vmatpush3.bf16.msra.mxu1 %v3864_v24 }
  0x55   :  { %3241 = vmatprep.subr.bf16.mxu1 %v3744_v0 }
  0x56   :  { %3264 = vmatpush3.bf16.msra.mxu0 %v4057_v6 }
  0x57   :  { %3265 = vmatprep.subr.bf16.mxu0 %v3744_v0 }
  0x58   :  { %3243 = vmatpush3.bf16.msra.mxu1 %v3884_v30 }
  0x59   :  { %3244 = vmatprep.subr.bf16.mxu1 %v3744_v0 }
  0x5a   :  { %3267 = vmatpush3.bf16.msra.mxu0 %v4069_v10 }
  0x5b   :  { %3268 = vmatprep.subr.bf16.mxu0 %v3744_v0 }
  0x5c   :  { %3246 = vmatpush3.bf16.msra.mxu1 %v3904_v36 }
  0x5d   :  { %3247 = vmatprep.subr.bf16.mxu1 %v3744_v0 }
  0x5e   :  { %3270 = vmatpush3.bf16.msra.mxu0 %v4081_v15 }
  0x5f   :  { %3271 = vmatprep.subr.bf16.mxu0 %v3744_v0 }
  0x60   :  { %3249 = vmatpush3.bf16.msra.mxu1 %v3924_v42 }
  0x61   :  { %3322 = vmatprep.subr.bf16.mxu1 %v3744_v0 }
  0x62   :  { %3273 = vmatpush3.bf16.msra.mxu0 %v4093_v19 }
  0x63   :  { %2463 = vmatmul.mubr.f32.vlgmr.msra.gmra.mrb[2].mxu1 %v3941_v46  ;;  %3274 = vmatprep.subr.bf16.mxu0 %v3744_v0 }
  0x64   :  { %2602 = vmatprep.mubr.msk.f32.mxu1 %vm3745_vm0, %v3746_v4  ;;  %3324 = vmatpush3.bf16.msra.mxu1 %v4013_v56 }
  0x65   :  { %3325 = vmatprep.subr.bf16.mxu1 %v3744_v0 }
  0x68   :  { %3327 = vmatpush3.bf16.msra.mxu1 %v4021_v58 }
  0x69   :  { %3328 = vmatprep.subr.bf16.mxu1 %v3744_v0 }
  0x6c   :  { %3330 = vmatpush3.bf16.msra.mxu1 %v4033_v61 }
  0x6d   :  { %3331 = vmatprep.subr.bf16.mxu1 %v3744_v0 }
  0x70   :  { %3333 = vmatpush3.bf16.msra.mxu1 %v4045_v1 }
  0x71   :  { %3334 = vmatprep.subr.bf16.mxu1 %v3744_v0 }
  0x74   :  { %3336 = vmatpush3.bf16.msra.mxu1 %v4057_v6 }
  0x75   :  { %3337 = vmatprep.subr.bf16.mxu1 %v3744_v0 }
  0x78   :  { %3339 = vmatpush3.bf16.msra.mxu1 %v4069_v10 }
  0x79   :  { %3340 = vmatprep.subr.bf16.mxu1 %v3744_v0 }
  0x7c   :  { %3342 = vmatpush3.bf16.msra.mxu1 %v4081_v15 }
  0x7d   :  { %3343 = vmatprep.subr.bf16.mxu1 %v3744_v0 }
  0x80   :  { %3345 = vmatpush3.bf16.msra.mxu1 %v4093_v19 }
  0x81   :  { %3346 = vmatprep.subr.bf16.mxu1 %v3744_v0 }
  0xf6   :  { %v227_v21 = vpop.f32.mrb[0].mxu1 }
  0xf7   :  { %v2359_v22 = vpop.f32.mrb[1].mxu1 }
  0xf8   :  { %v157_v31 = vpop.f32.mrb[0].mxu0 }
  0xf9   :  { %v2324_v33 = vpop.f32.mrb[1].mxu0 }
  0xfa   :  { %v1878_v33 = vld [vmem:[%s4495_s1 + $0x30] sm:$0xff] }
 0x118   :  { %v309_v37 = vpop.f32.mrb[2].mxu0 }
 0x119   :  { %v310_v39 = vadd.f32 %v4157_v35, %v309_v37  ;;  %v2394_v40 = vpop.f32.mrb[3].mxu0 }
 0x11b   :  { %313 = vst [vmem:[%s4499_s7] sm:$0xff] %v310_v39 }
 0x136   :  { %v452_v25 = vpop.f32.mrb[2].mxu1 }
 0x137   :  { %v3706_v27 = vadd.f32 %v4124_v23, %v452_v25  ;;  %v2464_v28 = vpop.f32.mrb[3].mxu1 }
 0x139   :  { %3730 = vtanh.f32 %v3706_v27 }
 0x143   :  { %v3731_v29 = vpop.eup %3730 }
 0x144   :  { %2498 = vmatmul.mubr.f32.vlgmr.msra.gmra.mrb[4].mxu0 %v3731_v29 }
 0x145   :  { %3276 = vmatpush3.bf16.msra.mxu0 %v3829_v14  ;;  %2532 = vmatprep.mubr.msk.f32.mxu0 %vm3745_vm0, %v3746_v4 }
 0x146   :  { %3277 = vmatprep.subr.bf16.mxu0 %v3744_v0 }
 0x149   :  { %3279 = vmatpush3.bf16.msra.mxu0 %v3849_v20 }
 0x14a   :  { %3280 = vmatprep.subr.bf16.mxu0 %v3744_v0 }
 0x14d   :  { %3282 = vmatpush3.bf16.msra.mxu0 %v3869_v26 }
 0x14e   :  { %3283 = vmatprep.subr.bf16.mxu0 %v3744_v0 }
 0x151   :  { %3285 = vmatpush3.bf16.msra.mxu0 %v3889_v32 }
 0x152   :  { %3286 = vmatprep.subr.bf16.mxu0 %v3744_v0 }
 0x155   :  { %3288 = vmatpush3.bf16.msra.mxu0 %v3909_v38 }
 0x156   :  { %3289 = vmatprep.subr.bf16.mxu0 %v3744_v0 }
 0x159   :  { %3291 = vmatpush3.bf16.msra.mxu0 %v3926_v43 }
 0x15a   :  { %3292 = vmatprep.subr.bf16.mxu0 %v3744_v0 }
 0x15d   :  { %3294 = vmatpush3.bf16.msra.mxu0 %v3943_v47 }
 0x15e   :  { %3295 = vmatprep.subr.bf16.mxu0 %v3744_v0 }
 0x161   :  { %3297 = vmatpush3.bf16.msra.mxu0 %v3956_v50 }
 0x162   :  { %3298 = vmatprep.subr.bf16.mxu0 %v3744_v0 }
 0x164   :  { %2533 = vmatmul.mubr.f32.vlgmr.msra.gmra.mrb[6].mxu0 %v1870_v34 }
 0x165   :  { %3300 = vmatpush3.bf16.msra.mxu0 %v3799_v5  ;;  %2567 = vmatprep.mubr.msk.f32.mxu0 %vm3745_vm0, %v3746_v4 }
 0x166   :  { %3301 = vmatprep.subr.bf16.mxu0 %v3744_v0 }
 0x169   :  { %3303 = vmatpush3.bf16.msra.mxu0 %v3808_v7 }
 0x16a   :  { %3304 = vmatprep.subr.bf16.mxu0 %v3744_v0 }
 0x16d   :  { %3306 = vmatpush3.bf16.msra.mxu0 %v3824_v12 }
 0x16e   :  { %3307 = vmatprep.subr.bf16.mxu0 %v3744_v0 }
 0x171   :  { %3309 = vmatpush3.bf16.msra.mxu0 %v3844_v18 }
 0x172   :  { %3310 = vmatprep.subr.bf16.mxu0 %v3744_v0 }
 0x175   :  { %3312 = vmatpush3.bf16.msra.mxu0 %v3864_v24 }
 0x176   :  { %3313 = vmatprep.subr.bf16.mxu0 %v3744_v0 }
 0x179   :  { %3315 = vmatpush3.bf16.msra.mxu0 %v3884_v30 }
 0x17a   :  { %3316 = vmatprep.subr.bf16.mxu0 %v3744_v0 }
 0x17d   :  { %3318 = vmatpush3.bf16.msra.mxu0 %v3904_v36 }
 0x17e   :  { %3319 = vmatprep.subr.bf16.mxu0 %v3744_v0 }
 0x181   :  { %3321 = vmatpush3.bf16.msra.mxu0 %v3924_v42 }
 0x182   :  { %3394 = vmatprep.subr.bf16.mxu0 %v3744_v0 }
 0x184   :  { %2568 = vmatmul.mubr.f32.vlgmr.msra.gmra.mrb[6].mxu0 %v3731_v29 }
 0x185   :  { %3396 = vmatpush3.bf16.msra.mxu0 %v4013_v56  ;;  %2707 = vmatprep.mubr.msk.f32.mxu0 %vm3745_vm0, %v3746_v4 }
 0x186   :  { %3397 = vmatprep.subr.bf16.mxu0 %v3744_v0 }
 0x189   :  { %3399 = vmatpush3.bf16.msra.mxu0 %v4021_v58 }
 0x18a   :  { %3400 = vmatprep.subr.bf16.mxu0 %v3744_v0 }
 0x18d   :  { %3402 = vmatpush3.bf16.msra.mxu0 %v4033_v61 }
 0x18e   :  { %3403 = vmatprep.subr.bf16.mxu0 %v3744_v0 }
 0x191   :  { %3405 = vmatpush3.bf16.msra.mxu0 %v4045_v1 }
 0x192   :  { %3406 = vmatprep.subr.bf16.mxu0 %v3744_v0 }
 0x195   :  { %3408 = vmatpush3.bf16.msra.mxu0 %v4057_v6 }
 0x196   :  { %3409 = vmatprep.subr.bf16.mxu0 %v3744_v0 }
 0x199   :  { %3411 = vmatpush3.bf16.msra.mxu0 %v4069_v10 }
 0x19a   :  { %3412 = vmatprep.subr.bf16.mxu0 %v3744_v0 }
 0x19d   :  { %3414 = vmatpush3.bf16.msra.mxu0 %v4081_v15 }
 0x19e   :  { %3415 = vmatprep.subr.bf16.mxu0 %v3744_v0 }
 0x1a1   :  { %3417 = vmatpush3.bf16.msra.mxu0 %v4093_v19 }
 0x1a2   :  { %3418 = vmatprep.subr.bf16.mxu0 %v3744_v0 }
 0x217   :  { %v529_v41 = vpop.f32.mrb[4].mxu0 }
 0x218   :  { %v530_v44 = vadd.f32 %v4157_v35, %v529_v41  ;;  %v2499_v45 = vpop.f32.mrb[5].mxu0 }
 0x21a   :  { %1869 = vst [vmem:[%s4499_s7 + $0x8] sm:$0xff] %v530_v44 }
 0x257   :  { %v673_v46 = vpop.f32.mrb[6].mxu0 }
 0x258   :  { %v3707_v48 = vadd.f32 %v4124_v23, %v673_v46  ;;  %v2569_v49 = vpop.f32.mrb[7].mxu0 }
 0x25a   :  { %3732 = vtanh.f32 %v3707_v48 }
 0x264   :  { %v3733_v51 = vpop.eup %3732 }
 0x265   :  { %2603 = vmatmul.mubr.f32.vlgmr.msra.gmra.mrb[4].mxu1 %v3733_v51 }
 0x266   :  { %3348 = vmatpush3.bf16.msra.mxu1 %v3829_v14  ;;  %2637 = vmatprep.mubr.msk.f32.mxu1 %vm3745_vm0, %v3746_v4 }
 0x267   :  { %3349 = vmatprep.subr.bf16.mxu1 %v3744_v0 }
 0x26a   :  { %3351 = vmatpush3.bf16.msra.mxu1 %v3849_v20 }
 0x26b   :  { %3352 = vmatprep.subr.bf16.mxu1 %v3744_v0 }
 0x26e   :  { %3354 = vmatpush3.bf16.msra.mxu1 %v3869_v26 }
 0x26f   :  { %3355 = vmatprep.subr.bf16.mxu1 %v3744_v0 }
 0x272   :  { %3357 = vmatpush3.bf16.msra.mxu1 %v3889_v32 }
 0x273   :  { %3358 = vmatprep.subr.bf16.mxu1 %v3744_v0 }
 0x276   :  { %3360 = vmatpush3.bf16.msra.mxu1 %v3909_v38 }
 0x277   :  { %3361 = vmatprep.subr.bf16.mxu1 %v3744_v0 }
 0x27a   :  { %3363 = vmatpush3.bf16.msra.mxu1 %v3926_v43 }
 0x27b   :  { %3364 = vmatprep.subr.bf16.mxu1 %v3744_v0 }
 0x27e   :  { %3366 = vmatpush3.bf16.msra.mxu1 %v3943_v47 }
 0x27f   :  { %3367 = vmatprep.subr.bf16.mxu1 %v3744_v0 }
 0x282   :  { %3369 = vmatpush3.bf16.msra.mxu1 %v3956_v50 }
 0x283   :  { %3370 = vmatprep.subr.bf16.mxu1 %v3744_v0 }
 0x285   :  { %2638 = vmatmul.mubr.f32.vlgmr.msra.gmra.mrb[6].mxu1 %v1872_v52 }
 0x286   :  { %3372 = vmatpush3.bf16.msra.mxu1 %v3799_v5  ;;  %2672 = vmatprep.mubr.msk.f32.mxu1 %vm3745_vm0, %v3746_v4 }
 0x287   :  { %3373 = vmatprep.subr.bf16.mxu1 %v3744_v0 }
 0x28a   :  { %3375 = vmatpush3.bf16.msra.mxu1 %v3808_v7 }
 0x28b   :  { %3376 = vmatprep.subr.bf16.mxu1 %v3744_v0 }
 0x28e   :  { %3378 = vmatpush3.bf16.msra.mxu1 %v3824_v12 }
 0x28f   :  { %3379 = vmatprep.subr.bf16.mxu1 %v3744_v0 }
 0x292   :  { %3381 = vmatpush3.bf16.msra.mxu1 %v3844_v18 }
 0x293   :  { %3382 = vmatprep.subr.bf16.mxu1 %v3744_v0 }
 0x296   :  { %3384 = vmatpush3.bf16.msra.mxu1 %v3864_v24 }
 0x297   :  { %3385 = vmatprep.subr.bf16.mxu1 %v3744_v0 }
 0x29a   :  { %3387 = vmatpush3.bf16.msra.mxu1 %v3884_v30 }
 0x29b   :  { %3388 = vmatprep.subr.bf16.mxu1 %v3744_v0 }
 0x29e   :  { %3390 = vmatpush3.bf16.msra.mxu1 %v3904_v36 }
 0x29f   :  { %3391 = vmatprep.subr.bf16.mxu1 %v3744_v0 }
 0x2a2   :  { %3393 = vmatpush3.bf16.msra.mxu1 %v3924_v42 }
 0x2a3   :  { %3466 = vmatprep.subr.bf16.mxu1 %v3744_v0 }
 0x2a5   :  { %2673 = vmatmul.mubr.f32.vlgmr.msra.gmra.mrb[6].mxu1 %v3733_v51 }
 0x2a6   :  { %3468 = vmatpush3.bf16.msra.mxu1 %v4013_v56  ;;  %2812 = vmatprep.mubr.msk.f32.mxu1 %vm3745_vm0, %v3746_v4 }
 0x2a7   :  { %3469 = vmatprep.subr.bf16.mxu1 %v3744_v0 }
 0x2aa   :  { %3471 = vmatpush3.bf16.msra.mxu1 %v4021_v58 }
 0x2ab   :  { %3472 = vmatprep.subr.bf16.mxu1 %v3744_v0 }
 0x2ae   :  { %3474 = vmatpush3.bf16.msra.mxu1 %v4033_v61 }
 0x2af   :  { %3475 = vmatprep.subr.bf16.mxu1 %v3744_v0 }
 0x2b2   :  { %3477 = vmatpush3.bf16.msra.mxu1 %v4045_v1 }
 0x2b3   :  { %3478 = vmatprep.subr.bf16.mxu1 %v3744_v0 }
 0x2b6   :  { %3480 = vmatpush3.bf16.msra.mxu1 %v4057_v6 }
 0x2b7   :  { %3481 = vmatprep.subr.bf16.mxu1 %v3744_v0 }
 0x2ba   :  { %3483 = vmatpush3.bf16.msra.mxu1 %v4069_v10 }
 0x2bb   :  { %3484 = vmatprep.subr.bf16.mxu1 %v3744_v0 }
 0x2be   :  { %3486 = vmatpush3.bf16.msra.mxu1 %v4081_v15 }
 0x2bf   :  { %3487 = vmatprep.subr.bf16.mxu1 %v3744_v0 }
 0x2c2   :  { %3489 = vmatpush3.bf16.msra.mxu1 %v4093_v19 }
 0x2c3   :  { %3490 = vmatprep.subr.bf16.mxu1 %v3744_v0 }
 0x338   :  { %v750_v53 = vpop.f32.mrb[4].mxu1 }
 0x339   :  { %v751_v54 = vadd.f32 %v4157_v35, %v750_v53  ;;  %v2604_v55 = vpop.f32.mrb[5].mxu1 }
 0x33b   :  { %1871 = vst [vmem:[%s4499_s7 + $0x10] sm:$0xff] %v751_v54 }
 0x378   :  { %v894_v57 = vpop.f32.mrb[6].mxu1 }
 0x379   :  { %v3708_v59 = vadd.f32 %v4124_v23, %v894_v57  ;;  %v2674_v60 = vpop.f32.mrb[7].mxu1 }
 0x37b   :  { %3734 = vtanh.f32 %v3708_v59 }
 0x385   :  { %v3735_v62 = vpop.eup %3734 }
 0x386   :  { %2708 = vmatmul.mubr.f32.vlgmr.msra.gmra.mrb[8].mxu0 %v3735_v62 }
 0x387   :  { %3420 = vmatpush3.bf16.msra.mxu0 %v3829_v14  ;;  %2742 = vmatprep.mubr.msk.f32.mxu0 %vm3745_vm0, %v3746_v4 }
 0x388   :  { %3421 = vmatprep.subr.bf16.mxu0 %v3744_v0 }
 0x38b   :  { %3423 = vmatpush3.bf16.msra.mxu0 %v3849_v20 }
 0x38c   :  { %3424 = vmatprep.subr.bf16.mxu0 %v3744_v0 }
 0x38f   :  { %3426 = vmatpush3.bf16.msra.mxu0 %v3869_v26 }
 0x390   :  { %3427 = vmatprep.subr.bf16.mxu0 %v3744_v0 }
 0x393   :  { %3429 = vmatpush3.bf16.msra.mxu0 %v3889_v32 }
 0x394   :  { %3430 = vmatprep.subr.bf16.mxu0 %v3744_v0 }
 0x397   :  { %3432 = vmatpush3.bf16.msra.mxu0 %v3909_v38 }
 0x398   :  { %3433 = vmatprep.subr.bf16.mxu0 %v3744_v0 }
 0x39b   :  { %3435 = vmatpush3.bf16.msra.mxu0 %v3926_v43 }
 0x39c   :  { %3436 = vmatprep.subr.bf16.mxu0 %v3744_v0 }
 0x39f   :  { %3438 = vmatpush3.bf16.msra.mxu0 %v3943_v47 }
 0x3a0   :  { %3439 = vmatprep.subr.bf16.mxu0 %v3744_v0 }
 0x3a3   :  { %3441 = vmatpush3.bf16.msra.mxu0 %v3956_v50 }
 0x3a4   :  { %3442 = vmatprep.subr.bf16.mxu0 %v3744_v0 }
 0x3a6   :  { %2743 = vmatmul.mubr.f32.vlgmr.msra.gmra.mrb[10].mxu0 %v1874_v63 }
 0x3a7   :  { %3444 = vmatpush3.bf16.msra.mxu0 %v3799_v5  ;;  %2777 = vmatprep.mubr.msk.f32.mxu0 %vm3745_vm0, %v3746_v4 }
 0x3a8   :  { %3445 = vmatprep.subr.bf16.mxu0 %v3744_v0 }
 0x3ab   :  { %3447 = vmatpush3.bf16.msra.mxu0 %v3808_v7 }
 0x3ac   :  { %3448 = vmatprep.subr.bf16.mxu0 %v3744_v0 }
 0x3af   :  { %3450 = vmatpush3.bf16.msra.mxu0 %v3824_v12 }
 0x3b0   :  { %3451 = vmatprep.subr.bf16.mxu0 %v3744_v0 }
 0x3b3   :  { %3453 = vmatpush3.bf16.msra.mxu0 %v3844_v18 }
 0x3b4   :  { %3454 = vmatprep.subr.bf16.mxu0 %v3744_v0 }
 0x3b7   :  { %3456 = vmatpush3.bf16.msra.mxu0 %v3864_v24 }
 0x3b8   :  { %3457 = vmatprep.subr.bf16.mxu0 %v3744_v0 }
 0x3bb   :  { %3459 = vmatpush3.bf16.msra.mxu0 %v3884_v30 }
 0x3bc   :  { %3460 = vmatprep.subr.bf16.mxu0 %v3744_v0 }
 0x3bf   :  { %3462 = vmatpush3.bf16.msra.mxu0 %v3904_v36 }
 0x3c0   :  { %3463 = vmatprep.subr.bf16.mxu0 %v3744_v0 }
 0x3c3   :  { %3465 = vmatpush3.bf16.msra.mxu0 %v3924_v42 }
 0x3c4   :  { %3538 = vmatprep.subr.bf16.mxu0 %v3744_v0 }
 0x3c6   :  { %2778 = vmatmul.mubr.f32.vlgmr.msra.gmra.mrb[10].mxu0 %v3735_v62 }
 0x3c7   :  { %3540 = vmatpush3.bf16.msra.mxu0 %v4013_v56  ;;  %2917 = vmatprep.mubr.msk.f32.mxu0 %vm3745_vm0, %v3746_v4 }
 0x3c8   :  { %3541 = vmatprep.subr.bf16.mxu0 %v3744_v0 }
 0x3cb   :  { %3543 = vmatpush3.bf16.msra.mxu0 %v4021_v58 }
 0x3cc   :  { %3544 = vmatprep.subr.bf16.mxu0 %v3744_v0 }
 0x3cf   :  { %3546 = vmatpush3.bf16.msra.mxu0 %v4033_v61 }
 0x3d0   :  { %3547 = vmatprep.subr.bf16.mxu0 %v3744_v0 }
 0x3d3   :  { %3549 = vmatpush3.bf16.msra.mxu0 %v4045_v1 }
 0x3d4   :  { %3550 = vmatprep.subr.bf16.mxu0 %v3744_v0 }
 0x3d7   :  { %3552 = vmatpush3.bf16.msra.mxu0 %v4057_v6 }
 0x3d8   :  { %3553 = vmatprep.subr.bf16.mxu0 %v3744_v0 }
 0x3db   :  { %3555 = vmatpush3.bf16.msra.mxu0 %v4069_v10 }
 0x3dc   :  { %3556 = vmatprep.subr.bf16.mxu0 %v3744_v0 }
 0x3df   :  { %3558 = vmatpush3.bf16.msra.mxu0 %v4081_v15 }
 0x3e0   :  { %3559 = vmatprep.subr.bf16.mxu0 %v3744_v0 }
 0x3e3   :  { %3561 = vmatpush3.bf16.msra.mxu0 %v4093_v19 }
 0x3e4   :  { %3562 = vmatprep.subr.bf16.mxu0 %v3744_v0 }
 0x459   :  { %v971_v2 = vpop.f32.mrb[8].mxu0 }
 0x45a   :  { %v972_v3 = vadd.f32 %v4157_v35, %v971_v2  ;;  %v2709_v8 = vpop.f32.mrb[9].mxu0 }
 0x45c   :  { %1873 = vst [vmem:[%s4499_s7 + $0x18] sm:$0xff] %v972_v3 }
 0x499   :  { %v1115_v9 = vpop.f32.mrb[10].mxu0 }
 0x49a   :  { %v3709_v11 = vadd.f32 %v4124_v23, %v1115_v9  ;;  %v2779_v13 = vpop.f32.mrb[11].mxu0 }
 0x49c   :  { %3736 = vtanh.f32 %v3709_v11 }
 0x4a6   :  { %v3737_v16 = vpop.eup %3736 }
 0x4a7   :  { %2813 = vmatmul.mubr.f32.vlgmr.msra.gmra.mrb[8].mxu1 %v3737_v16 }
 0x4a8   :  { %3492 = vmatpush3.bf16.msra.mxu1 %v3829_v14  ;;  %2847 = vmatprep.mubr.msk.f32.mxu1 %vm3745_vm0, %v3746_v4 }
 0x4a9   :  { %3493 = vmatprep.subr.bf16.mxu1 %v3744_v0 }
 0x4ac   :  { %3495 = vmatpush3.bf16.msra.mxu1 %v3849_v20 }
 0x4ad   :  { %3496 = vmatprep.subr.bf16.mxu1 %v3744_v0 }
 0x4b0   :  { %3498 = vmatpush3.bf16.msra.mxu1 %v3869_v26 }
 0x4b1   :  { %3499 = vmatprep.subr.bf16.mxu1 %v3744_v0 }
 0x4b4   :  { %3501 = vmatpush3.bf16.msra.mxu1 %v3889_v32 }
 0x4b5   :  { %3502 = vmatprep.subr.bf16.mxu1 %v3744_v0 }
 0x4b8   :  { %3504 = vmatpush3.bf16.msra.mxu1 %v3909_v38 }
 0x4b9   :  { %3505 = vmatprep.subr.bf16.mxu1 %v3744_v0 }
 0x4bc   :  { %3507 = vmatpush3.bf16.msra.mxu1 %v3926_v43 }
 0x4bd   :  { %3508 = vmatprep.subr.bf16.mxu1 %v3744_v0 }
 0x4c0   :  { %3510 = vmatpush3.bf16.msra.mxu1 %v3943_v47 }
 0x4c1   :  { %3511 = vmatprep.subr.bf16.mxu1 %v3744_v0 }
 0x4c4   :  { %3513 = vmatpush3.bf16.msra.mxu1 %v3956_v50 }
 0x4c5   :  { %3514 = vmatprep.subr.bf16.mxu1 %v3744_v0 }
 0x4c7   :  { %2848 = vmatmul.mubr.f32.vlgmr.msra.gmra.mrb[10].mxu1 %v1876_v17 }
 0x4c8   :  { %3516 = vmatpush3.bf16.msra.mxu1 %v3799_v5  ;;  %2882 = vmatprep.mubr.msk.f32.mxu1 %vm3745_vm0, %v3746_v4 }
 0x4c9   :  { %3517 = vmatprep.subr.bf16.mxu1 %v3744_v0 }
 0x4cc   :  { %3519 = vmatpush3.bf16.msra.mxu1 %v3808_v7 }
 0x4cd   :  { %3520 = vmatprep.subr.bf16.mxu1 %v3744_v0 }
 0x4d0   :  { %3522 = vmatpush3.bf16.msra.mxu1 %v3824_v12 }
 0x4d1   :  { %3523 = vmatprep.subr.bf16.mxu1 %v3744_v0 }
 0x4d4   :  { %3525 = vmatpush3.bf16.msra.mxu1 %v3844_v18 }
 0x4d5   :  { %3526 = vmatprep.subr.bf16.mxu1 %v3744_v0 }
 0x4d8   :  { %3528 = vmatpush3.bf16.msra.mxu1 %v3864_v24 }
 0x4d9   :  { %3529 = vmatprep.subr.bf16.mxu1 %v3744_v0 }
 0x4dc   :  { %3531 = vmatpush3.bf16.msra.mxu1 %v3884_v30 }
 0x4dd   :  { %3532 = vmatprep.subr.bf16.mxu1 %v3744_v0 }
 0x4e0   :  { %3534 = vmatpush3.bf16.msra.mxu1 %v3904_v36 }
 0x4e1   :  { %3535 = vmatprep.subr.bf16.mxu1 %v3744_v0 }
 0x4e4   :  { %3537 = vmatpush3.bf16.msra.mxu1 %v3924_v42 }
 0x4e5   :  { %3610 = vmatprep.subr.bf16.mxu1 %v3744_v0 }
 0x4e7   :  { %2883 = vmatmul.mubr.f32.vlgmr.msra.gmra.mrb[10].mxu1 %v3737_v16 }
 0x4e8   :  { %3612 = vmatpush3.bf16.msra.mxu1 %v4013_v56  ;;  %3022 = vmatprep.mubr.msk.f32.mxu1 %vm3745_vm0, %v3746_v4 }
 0x4e9   :  { %3613 = vmatprep.subr.bf16.mxu1 %v3744_v0 }
 0x4ec   :  { %3615 = vmatpush3.bf16.msra.mxu1 %v4021_v58 }
 0x4ed   :  { %3616 = vmatprep.subr.bf16.mxu1 %v3744_v0 }
 0x4f0   :  { %3618 = vmatpush3.bf16.msra.mxu1 %v4033_v61 }
 0x4f1   :  { %3619 = vmatprep.subr.bf16.mxu1 %v3744_v0 }
 0x4f4   :  { %3621 = vmatpush3.bf16.msra.mxu1 %v4045_v1 }
 0x4f5   :  { %3622 = vmatprep.subr.bf16.mxu1 %v3744_v0 }
 0x4f8   :  { %3624 = vmatpush3.bf16.msra.mxu1 %v4057_v6 }
 0x4f9   :  { %3625 = vmatprep.subr.bf16.mxu1 %v3744_v0 }
 0x4fc   :  { %3627 = vmatpush3.bf16.msra.mxu1 %v4069_v10 }
 0x4fd   :  { %3628 = vmatprep.subr.bf16.mxu1 %v3744_v0 }
 0x500   :  { %3630 = vmatpush3.bf16.msra.mxu1 %v4081_v15 }
 0x501   :  { %3631 = vmatprep.subr.bf16.mxu1 %v3744_v0 }
 0x504   :  { %3633 = vmatpush3.bf16.msra.mxu1 %v4093_v19 }
 0x505   :  { %3634 = vmatprep.subr.bf16.mxu1 %v3744_v0 }
 0x57a   :  { %v1192_v21 = vpop.f32.mrb[8].mxu1 }
 0x57b   :  { %v1193_v22 = vadd.f32 %v4157_v35, %v1192_v21  ;;  %v2814_v25 = vpop.f32.mrb[9].mxu1 }
 0x57d   :  { %1875 = vst [vmem:[%s4499_s7 + $0x20] sm:$0xff] %v1193_v22 }
 0x5ba   :  { %v1336_v27 = vpop.f32.mrb[10].mxu1 }
 0x5bb   :  { %v3710_v28 = vadd.f32 %v4124_v23, %v1336_v27  ;;  %v2884_v29 = vpop.f32.mrb[11].mxu1 }
 0x5bd   :  { %3738 = vtanh.f32 %v3710_v28 }
 0x5c7   :  { %v3739_v31 = vpop.eup %3738 }
 0x5c8   :  { %2918 = vmatmul.mubr.f32.vlgmr.msra.gmra.mrb[12].mxu0 %v3739_v31 }
 0x5c9   :  { %3564 = vmatpush3.bf16.msra.mxu0 %v3829_v14  ;;  %2952 = vmatprep.mubr.msk.f32.mxu0 %vm3745_vm0, %v3746_v4 }
 0x5ca   :  { %3565 = vmatprep.subr.bf16.mxu0 %v3744_v0 }
 0x5cd   :  { %3567 = vmatpush3.bf16.msra.mxu0 %v3849_v20 }
 0x5ce   :  { %3568 = vmatprep.subr.bf16.mxu0 %v3744_v0 }
 0x5d1   :  { %3570 = vmatpush3.bf16.msra.mxu0 %v3869_v26 }
 0x5d2   :  { %3571 = vmatprep.subr.bf16.mxu0 %v3744_v0 }
 0x5d5   :  { %3573 = vmatpush3.bf16.msra.mxu0 %v3889_v32 }
 0x5d6   :  { %3574 = vmatprep.subr.bf16.mxu0 %v3744_v0 }
 0x5d9   :  { %3576 = vmatpush3.bf16.msra.mxu0 %v3909_v38 }
 0x5da   :  { %3577 = vmatprep.subr.bf16.mxu0 %v3744_v0 }
 0x5dd   :  { %3579 = vmatpush3.bf16.msra.mxu0 %v3926_v43 }
 0x5de   :  { %3580 = vmatprep.subr.bf16.mxu0 %v3744_v0 }
 0x5e1   :  { %3582 = vmatpush3.bf16.msra.mxu0 %v3943_v47 }
 0x5e2   :  { %3583 = vmatprep.subr.bf16.mxu0 %v3744_v0 }
 0x5e5   :  { %3585 = vmatpush3.bf16.msra.mxu0 %v3956_v50 }
 0x5e6   :  { %3586 = vmatprep.subr.bf16.mxu0 %v3744_v0 }
 0x5e8   :  { %2953 = vmatmul.mubr.f32.vlgmr.msra.gmra.mrb[14].mxu0 %v1878_v33 }
 0x5e9   :  { %3588 = vmatpush3.bf16.msra.mxu0 %v3799_v5  ;;  %2987 = vmatprep.mubr.msk.f32.mxu0 %vm3745_vm0, %v3746_v4 }
 0x5ea   :  { %3589 = vmatprep.subr.bf16.mxu0 %v3744_v0 }
 0x5ed   :  { %3591 = vmatpush3.bf16.msra.mxu0 %v3808_v7 }
 0x5ee   :  { %3592 = vmatprep.subr.bf16.mxu0 %v3744_v0 }
 0x5f1   :  { %3594 = vmatpush3.bf16.msra.mxu0 %v3824_v12 }
 0x5f2   :  { %3595 = vmatprep.subr.bf16.mxu0 %v3744_v0 }
 0x5f5   :  { %3597 = vmatpush3.bf16.msra.mxu0 %v3844_v18 }
 0x5f6   :  { %3598 = vmatprep.subr.bf16.mxu0 %v3744_v0 }
 0x5f9   :  { %3600 = vmatpush3.bf16.msra.mxu0 %v3864_v24 }
 0x5fa   :  { %3601 = vmatprep.subr.bf16.mxu0 %v3744_v0 }
 0x5fd   :  { %3603 = vmatpush3.bf16.msra.mxu0 %v3884_v30 }
 0x5fe   :  { %3604 = vmatprep.subr.bf16.mxu0 %v3744_v0 }
 0x601   :  { %3606 = vmatpush3.bf16.msra.mxu0 %v3904_v36 }
 0x602   :  { %3607 = vmatprep.subr.bf16.mxu0 %v3744_v0 }
 0x605   :  { %3609 = vmatpush3.bf16.msra.mxu0 %v3924_v42 }
 0x606   :  { %3682 = vmatprep.subr.bf16.mxu0 %v3744_v0 }
 0x608   :  { %2988 = vmatmul.mubr.f32.vlgmr.msra.gmra.mrb[14].mxu0 %v3739_v31 }
 0x609   :  { %3684 = vmatpush3.bf16.msra.mxu0 %v4013_v56  ;;  %3127 = vmatprep.mubr.msk.f32.mxu0 %vm3745_vm0, %v3746_v4 }
 0x60a   :  { %3685 = vmatprep.subr.bf16.mxu0 %v3744_v0 }
 0x60d   :  { %3687 = vmatpush3.bf16.msra.mxu0 %v4021_v58 }
 0x60e   :  { %3688 = vmatprep.subr.bf16.mxu0 %v3744_v0 }
 0x611   :  { %3690 = vmatpush3.bf16.msra.mxu0 %v4033_v61 }
 0x612   :  { %3691 = vmatprep.subr.bf16.mxu0 %v3744_v0 }
 0x615   :  { %3693 = vmatpush3.bf16.msra.mxu0 %v4045_v1 }
 0x616   :  { %3694 = vmatprep.subr.bf16.mxu0 %v3744_v0 }
 0x619   :  { %3696 = vmatpush3.bf16.msra.mxu0 %v4057_v6 }
 0x61a   :  { %3697 = vmatprep.subr.bf16.mxu0 %v3744_v0 }
 0x61d   :  { %3699 = vmatpush3.bf16.msra.mxu0 %v4069_v10 }
 0x61e   :  { %3700 = vmatprep.subr.bf16.mxu0 %v3744_v0 }
 0x621   :  { %3702 = vmatpush3.bf16.msra.mxu0 %v4081_v15 }
 0x622   :  { %3703 = vmatprep.subr.bf16.mxu0 %v3744_v0 }
 0x625   :  { %3705 = vmatpush3.bf16.msra.mxu0 %v4093_v19 }
 0x69b   :  { %v1413_v56 = vpop.f32.mrb[12].mxu0 }
 0x69c   :  { %v1414_v58 = vadd.f32 %v4157_v35, %v1413_v56  ;;  %v2919_v61 = vpop.f32.mrb[13].mxu0 }
 0x69e   :  { %1877 = vst [vmem:[%s4499_s7 + $0x28] sm:$0xff] %v1414_v58 }
 0x6db   :  { %v1557_v1 = vpop.f32.mrb[14].mxu0 }
 0x6dc   :  { %v3711_v6 = vadd.f32 %v4124_v23, %v1557_v1  ;;  %v2989_v10 = vpop.f32.mrb[15].mxu0 }
 0x6de   :  { %3740 = vtanh.f32 %v3711_v6 }
 0x6e8   :  { %v3741_v34 = vpop.eup %3740 }
 0x6e9   :  { %3023 = vmatmul.mubr.f32.vlgmr.msra.gmra.mrb[12].mxu1 %v3741_v34 }
 0x6ea   :  { %3636 = vmatpush3.bf16.msra.mxu1 %v3829_v14  ;;  %3057 = vmatprep.mubr.msk.f32.mxu1 %vm3745_vm0, %v3746_v4  ;;  %v1880_v14 = vld [vmem:[%s4495_s1 + $0x38] sm:$0xff] }
 0x6eb   :  { %3637 = vmatprep.subr.bf16.mxu1 %v3744_v0 }
 0x6ee   :  { %3639 = vmatpush3.bf16.msra.mxu1 %v3849_v20 }
 0x6ef   :  { %3640 = vmatprep.subr.bf16.mxu1 %v3744_v0 }
 0x6f2   :  { %3642 = vmatpush3.bf16.msra.mxu1 %v3869_v26 }
 0x6f3   :  { %3643 = vmatprep.subr.bf16.mxu1 %v3744_v0 }
 0x6f6   :  { %3645 = vmatpush3.bf16.msra.mxu1 %v3889_v32 }
 0x6f7   :  { %3646 = vmatprep.subr.bf16.mxu1 %v3744_v0 }
 0x6fa   :  { %3648 = vmatpush3.bf16.msra.mxu1 %v3909_v38 }
 0x6fb   :  { %3649 = vmatprep.subr.bf16.mxu1 %v3744_v0 }
 0x6fe   :  { %3651 = vmatpush3.bf16.msra.mxu1 %v3926_v43 }
 0x6ff   :  { %3652 = vmatprep.subr.bf16.mxu1 %v3744_v0 }
 0x702   :  { %3654 = vmatpush3.bf16.msra.mxu1 %v3943_v47 }
 0x703   :  { %3655 = vmatprep.subr.bf16.mxu1 %v3744_v0 }
 0x706   :  { %3657 = vmatpush3.bf16.msra.mxu1 %v3956_v50 }
 0x707   :  { %3658 = vmatprep.subr.bf16.mxu1 %v3744_v0 }
 0x709   :  { %3058 = vmatmul.mubr.f32.vlgmr.msra.gmra.mrb[14].mxu1 %v1880_v14 }
 0x70a   :  { %3660 = vmatpush3.bf16.msra.mxu1 %v3799_v5  ;;  %3092 = vmatprep.mubr.msk.f32.mxu1 %vm3745_vm0, %v3746_v4 }
 0x70b   :  { %3661 = vmatprep.subr.bf16.mxu1 %v3744_v0 }
 0x70e   :  { %3663 = vmatpush3.bf16.msra.mxu1 %v3808_v7 }
 0x70f   :  { %3664 = vmatprep.subr.bf16.mxu1 %v3744_v0 }
 0x712   :  { %3666 = vmatpush3.bf16.msra.mxu1 %v3824_v12 }
 0x713   :  { %3667 = vmatprep.subr.bf16.mxu1 %v3744_v0 }
 0x716   :  { %3669 = vmatpush3.bf16.msra.mxu1 %v3844_v18 }
 0x717   :  { %3670 = vmatprep.subr.bf16.mxu1 %v3744_v0 }
 0x71a   :  { %3672 = vmatpush3.bf16.msra.mxu1 %v3864_v24 }
 0x71b   :  { %3673 = vmatprep.subr.bf16.mxu1 %v3744_v0 }
 0x71e   :  { %3675 = vmatpush3.bf16.msra.mxu1 %v3884_v30 }
 0x71f   :  { %3676 = vmatprep.subr.bf16.mxu1 %v3744_v0 }
 0x722   :  { %3678 = vmatpush3.bf16.msra.mxu1 %v3904_v36 }
 0x723   :  { %3679 = vmatprep.subr.bf16.mxu1 %v3744_v0 }
 0x726   :  { %3681 = vmatpush3.bf16.msra.mxu1 %v3924_v42 }
 0x729   :  { %3093 = vmatmul.mubr.f32.vlgmr.msra.gmra.mrb[14].mxu1 %v3741_v34 }
 0x7bc   :  { %v1634_v4 = vpop.f32.mrb[12].mxu1 }
 0x7bd   :  { %v1635_v5 = vadd.f32 %v4157_v35, %v1634_v4  ;;  %v3024_v7 = vpop.f32.mrb[13].mxu1 }
 0x7bf   :  { %1879 = vst [vmem:[%s4499_s7 + $0x30] sm:$0xff] %v1635_v5 }
 0x7fc   :  { %v1778_v12 = vpop.f32.mrb[14].mxu1 }
 0x7fd   :  { %v3712_v18 = vadd.f32 %v4124_v23, %v1778_v12  ;;  %v3094_v20 = vpop.f32.mrb[15].mxu1 }
 0x7ff   :  { %3742 = vtanh.f32 %v3712_v18 }
 0x809   :  { %v3743_v24 = vpop.eup %3742 }
 0x80a   :  { %3128 = vmatmul.mubr.f32.vlgmr.msra.gmra.mrb[16].mxu0 %v3743_v24 }
 0x8dd   :  { %v1855_v26 = vpop.f32.mrb[16].mxu0 }
 0x8de   :  { %v1856_v0 = vadd.f32 %v4157_v35, %v1855_v26  ;;  %v3129_v30 = vpop.f32.mrb[17].mxu0 }
 0x8e0   :  { %1881 = vst [vmem:[%s4499_s7 + $0x38] sm:$0xff] %v1856_v0 }

</bundles_post_ra>
